<compile_context>
chip_gen: v7x
topology: tpu7x:2x2x1
jax: 0.10.0
libtpu: 0.0.40
codegen_flags: <defaults>
</compile_context>

<pallas_src>
import functools

import jax
import jax.numpy as jnp
from jax.experimental import pallas as pl
from jax.experimental.pallas import tpu as pltpu

EPS = 1e-5                                # torch BatchNorm1d default eps
DEFAULT_BLOCK_BYTES = 2 * 1024 * 1024     # target f32 bytes per (TB, C, TL) x-block
VMEM_LIMIT = 48 * 1024 * 1024             # <= v7x physical VMEM (64 MiB)


# ----------------------------- kernels ------------------------------------- #

def _stats1_kernel(x_ref, w1_ref, st_ref, *, tb, tile_len, true_len, n_arb,
                   needs_mask):
    """Accumulate per-batch, per-channel [sum, sumsq] of h1 = W1 @ x."""
    @pl.when(pl.program_id(2) == 0)
    def _():
        st_ref[...] = jnp.zeros_like(st_ref)

    c_out = w1_ref.shape[0]
    if needs_mask:
        start = (pl.program_id(1) * n_arb + pl.program_id(2)) * tile_len
        lane = jax.lax.broadcasted_iota(jnp.int32, (c_out, tile_len), 1)
        keep = lane < (true_len - start)

    w1 = w1_ref[...]
    rows = []
    for b in range(tb):
        x = x_ref[b].astype(jnp.bfloat16)                              # (C, TL)
        h = jnp.dot(w1, x, preferred_element_type=jnp.float32)
        if needs_mask:  # OOB lanes of the partial block hold garbage -> zero them
            h = jnp.where(keep, h, 0.0)
        s = jnp.sum(h, axis=-1, keepdims=True)                         # (C, 1)
        q = jnp.sum(h * h, axis=-1, keepdims=True)                     # (C, 1)
        rows.append(jnp.concatenate([s, q], axis=-1))                  # (C, 2)
    st_ref[...] += jnp.stack(rows, axis=0)[:, None]                    # (TB,1,C,2)


def _stats2_kernel(x_ref, w1_ref, w2_ref, s1_ref, t1_ref, st_ref, *, tb, tile_len,
                   true_len, n_arb, needs_mask):
    """Accumulate per-batch [sum, sumsq] of h2 = W2 @ relu(bn1(W1 @ x))."""
    @pl.when(pl.program_id(2) == 0)
    def _():
        st_ref[...] = jnp.zeros_like(st_ref)

    c_out = w1_ref.shape[0]
    if needs_mask:
        start = (pl.program_id(1) * n_arb + pl.program_id(2)) * tile_len
        lane = jax.lax.broadcasted_iota(jnp.int32, (c_out, tile_len), 1)
        keep = lane < (true_len - start)

    w1 = w1_ref[...]
    w2 = w2_ref[...]
    s1 = s1_ref[...]
    t1 = t1_ref[...]
    rows = []
    for b in range(tb):
        x = x_ref[b].astype(jnp.bfloat16)                              # (C, TL)
        h1 = jnp.dot(w1, x, preferred_element_type=jnp.float32)
        a1 = jnp.maximum(h1 * s1 + t1, 0.0)                            # bn1 + relu
        if needs_mask:  # OOB lanes would be relu(shift1) != 0 -> zero them
            a1 = jnp.where(keep, a1, 0.0)
        h2 = jnp.dot(w2, a1.astype(jnp.bfloat16),
                     preferred_element_type=jnp.float32)
        s = jnp.sum(h2, axis=-1, keepdims=True)
        q = jnp.sum(h2 * h2, axis=-1, keepdims=True)
        rows.append(jnp.concatenate([s, q], axis=-1))
    st_ref[...] += jnp.stack(rows, axis=0)[:, None]


def _final_kernel(x_ref, w1_ref, w2_ref, s1_ref, t1_ref, s2_ref, t2_ref,
                  g_ref, o_ref, *, tb):
    """Recompute conv path, apply bn2 + SE gate + residual + final ReLU."""
    w1 = w1_ref[...]
    w2 = w2_ref[...]
    s1 = s1_ref[...]
    t1 = t1_ref[...]
    s2 = s2_ref[...]
    t2 = t2_ref[...]
    for b in range(tb):
        x = x_ref[b]                                                   # (C, TL) f32
        h1 = jnp.dot(w1, x.astype(jnp.bfloat16),
                     preferred_element_type=jnp.float32)
        a1 = jnp.maximum(h1 * s1 + t1, 0.0)
        h2 = jnp.dot(w2, a1.astype(jnp.bfloat16),
                     preferred_element_type=jnp.float32)
        y = h2 * s2 + t2                                               # bn2
        # OOB lanes of a partial last block are garbage but lane-local; Pallas
        # writes back only the in-bounds portion of the output block.
        o_ref[b] = jnp.maximum(y * g_ref[b] + x, 0.0).astype(o_ref.dtype)


# ----------------------------- wrapper -------------------------------------- #

def _bn_affine(ch_sum, ch_sq, gamma, beta, count):
    """Fold training-mode BN into per-channel (scale, shift), shape (C, 1)."""
    mean = ch_sum / count
    var = jnp.maximum(ch_sq / count - mean * mean, 0.0)
    scale = gamma * jax.lax.rsqrt(var + EPS)
    shift = beta - mean * scale
    return (scale.reshape(-1, 1).astype(jnp.float32),
            shift.reshape(-1, 1).astype(jnp.float32))


def _choose_tiles(B, C, L, budget_bytes):
    """Pick (TB, TL): batches per grid step and L-tile width."""
    bytes_per_l = C * 4
    row_bytes = L * bytes_per_l
    if row_bytes <= budget_bytes:
        # Full-L tiles (no mask, no 128-alignment requirement); block batches.
        tb_cap = max(1, budget_bytes // row_bytes)
        tb = max(d for d in range(1, B + 1) if B % d == 0 and d <= tb_cap)
        return tb, L
    # L must be tiled: one batch per step, TL a large multiple of 128.
    tl = max(128, (budget_bytes // bytes_per_l) // 128 * 128)
    return 1, tl


def se_basic_block(x, params, block_budget_bytes=None):
    """x: (B, C, L) float32 (PyTorch NCL).  Returns (B, C, L) float32."""
    w1, b1, g1, be1, w2, b2, g2, be2, wse1, wse2 = params
    # conv biases are exactly cancelled by training-mode BN mean subtraction.
    del b1, b2
    B, C, L = x.shape

    budget = DEFAULT_BLOCK_BYTES if block_budget_bytes is None else block_budget_bytes
    TB, TL = _choose_tiles(B, C, L, budget)
    n_b = B // TB
    n_l = pl.cdiv(L, TL)
    needs_mask = (L % TL) != 0
    # Parallel L sub-split for the stats passes (keeps both v7x TCs busy even when
    # n_b == 1).  Only used when it divides the tile count evenly (no extra tiles).
    n_par = 2 if (n_l >= 2 and n_l % 2 == 0) else 1
    n_arb = n_l // n_par

    w1b = w1.astype(jnp.bfloat16)   # (C_out, C_in)
    w2b = w2.astype(jnp.bfloat16)

    # ---- stats passes: grid (n_b, n_par, n_arb) ----
    x_spec3 = pl.BlockSpec((TB, C, TL), lambda b, p, l: (b, 0, p * n_arb + l))
    w_spec3 = pl.BlockSpec((C, C), lambda b, p, l: (0, 0))
    v_spec3 = pl.BlockSpec((C, 1), lambda b, p, l: (0, 0))
    st_spec = pl.BlockSpec((TB, 1, C, 2), lambda b, p, l: (b, p, 0, 0))
    st_shape = jax.ShapeDtypeStruct((B, n_par, C, 2), jnp.float32)

    stats_cp = pltpu.CompilerParams(
        dimension_semantics=("parallel", "parallel", "arbitrary"),
        vmem_limit_bytes=VMEM_LIMIT)

    kw = dict(tb=TB, tile_len=TL, true_len=L, n_arb=n_arb, needs_mask=needs_mask)

    # ---- pass 1: conv1 statistics -> bn1 scale/shift ----
    st1 = pl.pallas_call(
        functools.partial(_stats1_kernel, **kw),
        out_shape=st_shape,
        grid=(n_b, n_par, n_arb),
        in_specs=[x_spec3, w_spec3],
        out_specs=st_spec,
        compiler_params=stats_cp,
    )(x, w1b)

    count = B * L
    s1, t1 = _bn_affine(jnp.sum(st1[..., 0], axis=(0, 1)),
                        jnp.sum(st1[..., 1], axis=(0, 1)), g1, be1, count)

    # ---- pass 2: conv2 statistics -> bn2 scale/shift + SE gate ----
    st2 = pl.pallas_call(
        functools.partial(_stats2_kernel, **kw),
        out_shape=st_shape,
        grid=(n_b, n_par, n_arb),
        in_specs=[x_spec3, w_spec3, w_spec3, v_spec3, v_spec3],
        out_specs=st_spec,
        compiler_params=stats_cp,
    )(x, w1b, w2b, s1, t1)

    s2, t2 = _bn_affine(jnp.sum(st2[..., 0], axis=(0, 1)),
                        jnp.sum(st2[..., 1], axis=(0, 1)), g2, be2, count)

    # SE squeeze/excite: (B, C)-sized MLP, negligible -> plain JAX glue.
    b_sum2 = jnp.sum(st2[..., 0], axis=1)                              # (B, C)
    y = b_sum2 / L * s2[:, 0][None, :] + t2[:, 0][None, :]             # pooled bn2 out
    z = jnp.maximum(y @ wse1.T, 0.0)                                   # (B, C//r)
    gate = jax.nn.sigmoid(z @ wse2.T).reshape(B, C, 1).astype(jnp.float32)

    # ---- pass 3: apply bn2 + SE gate + residual + ReLU (fully parallel) ----
    x_spec2 = pl.BlockSpec((TB, C, TL), lambda b, l: (b, 0, l))
    w_spec2 = pl.BlockSpec((C, C), lambda b, l: (0, 0))
    v_spec2 = pl.BlockSpec((C, 1), lambda b, l: (0, 0))
    g_spec2 = pl.BlockSpec((TB, C, 1), lambda b, l: (b, 0, 0))

    final_cp = pltpu.CompilerParams(
        dimension_semantics=("parallel", "parallel"),
        vmem_limit_bytes=VMEM_LIMIT)

    out = pl.pallas_call(
        functools.partial(_final_kernel, tb=TB),
        out_shape=jax.ShapeDtypeStruct((B, C, L), x.dtype),
        grid=(n_b, n_l),
        in_specs=[x_spec2, w_spec2, w_spec2, v_spec2, v_spec2, v_spec2, v_spec2,
                  g_spec2],
        out_specs=x_spec2,
        compiler_params=final_cp,
    )(x, w1b, w2b, s1, t1, s2, t2, gate)

    return out


# ----------------------------- reference (self-check) ----------------------- #

def _reference(x, params):
    w1, b1, g1, be1, w2, b2, g2, be2, wse1, wse2 = params

    def mm(w, h):   # emulate the kernel's bf16-operand / f32-accumulate matmul
        return jnp.einsum("oc,bcl->bol", w.astype(jnp.bfloat16),
                          h.astype(jnp.bfloat16),
                          preferred_element_type=jnp.float32)

    def bn(h, gamma, beta):
        mean = jnp.mean(h, axis=(0, 2), keepdims=True)
        var = jnp.mean((h - mean) ** 2, axis=(0, 2), keepdims=True)
        return ((h - mean) * jax.lax.rsqrt(var + EPS) * gamma.reshape(1, -1, 1)
                + beta.reshape(1, -1, 1))

    h = mm(w1, x) + b1.reshape(1, -1, 1)
    h = jnp.maximum(bn(h, g1, be1), 0.0)
    h = mm(w2, h) + b2.reshape(1, -1, 1)
    h = bn(h, g2, be2)
    y = jnp.mean(h, axis=2)
    z = jnp.maximum(y @ wse1.T, 0.0)
    s = jax.nn.sigmoid(z @ wse2.T)
    return jnp.maximum(h * s[:, :, None] + x, 0.0)


# ----------------------------- demo ----------------------------------------- #

if __name__ == "__main__":
    def make_inputs(B, C, L, red):
        key = jax.random.PRNGKey(0)
        keys = jax.random.split(key, 11)
        x = jax.random.normal(keys[0], (B, C, L), jnp.float32)
        # torch-native parameter layouts:
        w1 = 0.1 * jax.random.normal(keys[1], (C, C), jnp.float32)       # (out, in)
        b1 = 0.1 * jax.random.normal(keys[2], (C,), jnp.float32)
        g1 = 1.0 + 0.1 * jax.random.normal(keys[3], (C,), jnp.float32)
        be1 = 0.1 * jax.random.normal(keys[4], (C,), jnp.float32)
        w2 = 0.1 * jax.random.normal(keys[5], (C, C), jnp.float32)
        b2 = 0.1 * jax.random.normal(keys[6], (C,), jnp.float32)
        g2 = 1.0 + 0.1 * jax.random.normal(keys[7], (C,), jnp.float32)
        be2 = 0.1 * jax.random.normal(keys[8], (C,), jnp.float32)
        wse1 = 0.1 * jax.random.normal(keys[9], (C // red, C), jnp.float32)
        wse2 = 0.1 * jax.random.normal(keys[10], (C, C // red), jnp.float32)
        return x, (w1, b1, g1, be1, w2, b2, g2, be2, wse1, wse2)

    run = jax.jit(se_basic_block, static_argnames=("block_budget_bytes",))

    # (B, C, L, reduction, block_budget_bytes) -- small budgets force the tiled /
    # masked / batch-blocked paths to be exercised at small shapes.
    configs = [
        (4, 32, 128, 16, None),        # full-L block, TB=B, single grid step
        (4, 32, 128, 16, 32 * 1024),   # batch-blocked: TB=2, two batch blocks
        (2, 32, 1000, 16, 32 * 1024),  # L-tiled + lane mask, parallel L split
        (3, 32, 640, 16, 32 * 1024),   # L-tiled + lane mask, odd tile count
    ]

    for (B, C, L, red, budget) in configs:
        x, params = make_inputs(B, C, L, red)
        out = run(x, params, block_budget_bytes=budget)
        jax.block_until_ready(out)

        assert out.shape == (B, C, L), out.shape
        assert out.dtype == jnp.float32
        assert bool(jnp.all(out >= 0.0))   # final ReLU

        ref = _reference(x, params)
        max_err = float(jnp.max(jnp.abs(out - ref)))
        assert max_err < 2e-2, f"mismatch vs reference (B={B}, L={L}): {max_err}"

    print("KERNEL_OK")
</pallas_src>

<mosaic_0001>
module attributes {stable_mosaic.version = 11 : i64} {
  func.func @_stats1_kernel(%arg0: i32, %arg1: i32, %arg2: i32, %arg3: memref<4x32x128xf32, #tpu.memory_space<vmem>>, %arg4: memref<32x32xbf16, #tpu.memory_space<vmem>>, %arg5: memref<4x1x32x2xf32, #tpu.memory_space<vmem>>) attributes {dimension_semantics = [#tpu.dimension_semantics<parallel>, #tpu.dimension_semantics<parallel>, #tpu.dimension_semantics<arbitrary>], iteration_bounds = array<i64: 1, 1, 1>, scalar_prefetch = 0 : i64, scratch_operands = 0 : i64, tpu.core_type = #tpu.core_type<tc>, window_params = [{transform_indices = @transform_0, window_bounds = array<i64: 4, 32, 128>}, {pipeline_mode = #tpu.pipeline_mode<synchronous>, transform_indices = @transform_1, window_bounds = array<i64: 32, 32>}, {transform_indices = @transform_2, window_bounds = array<i64: 4, 1, 32, 2>}]} {
    %c0_i32 = arith.constant 0 : i32
    %0 = arith.cmpi eq, %arg2, %c0_i32 : i32
    %1 = arith.extui %0 : i1 to i32
    %c0_i32_0 = arith.constant 0 : i32
    %2 = arith.cmpi ne, %1, %c0_i32_0 : i32
    scf.if %2 {
      %cst_30 = arith.constant 0.000000e+00 : f32
      %53 = vector.broadcast %cst_30 : f32 to vector<4x1x32x2xf32>
      %c0_31 = arith.constant 0 : index
      %c0_32 = arith.constant 0 : index
      %c0_33 = arith.constant 0 : index
      %c0_34 = arith.constant 0 : index
      %54 = vector.load %arg5[%c0_31, %c0_32, %c0_33, %c0_34] : memref<4x1x32x2xf32, #tpu.memory_space<vmem>>, vector<4x1x32x2xf32>
      tpu.vector_store %arg5[%c0_31, %c0_32, %c0_33, %c0_34], %53 {strides = array<i32>} : memref<4x1x32x2xf32, #tpu.memory_space<vmem>>, vector<4x1x32x2xf32>,
    } else {
    }
    %c0 = arith.constant 0 : index
    %c0_1 = arith.constant 0 : index
    %3 = vector.load %arg4[%c0, %c0_1] : memref<32x32xbf16, #tpu.memory_space<vmem>>, vector<32x32xbf16>
    %c0_2 = arith.constant 0 : index
    %c0_3 = arith.constant 0 : index
    %c0_4 = arith.constant 0 : index
    %4 = vector.load %arg3[%c0_2, %c0_3, %c0_4] : memref<4x32x128xf32, #tpu.memory_space<vmem>>, vector<1x32x128xf32>
    %5 = vector.shape_cast %4 : vector<1x32x128xf32> to vector<32x128xf32>
    %6 = arith.truncf %5 : vector<32x128xf32> to vector<32x128xbf16>
    %cst = arith.constant dense<0.000000e+00> : vector<32x128xf32>
    %7 = tpu.matmul %3, %6, %cst {dimension_numbers = #tpu.dot_dimension_numbers<[1], [0], [0], [1], [0, 0, 1, 1], [], []>} : vector<32x32xbf16>, vector<32x128xbf16>, vector<32x128xf32> -> vector<32x128xf32>
    %cst_5 = arith.constant dense<0.000000e+00> : vector<32xf32>
    %8 = vector.multi_reduction <add>, %7, %cst_5 [1] : vector<32x128xf32> to vector<32xf32>
    %9 = vector.shape_cast %8 : vector<32xf32> to vector<32x1xf32>
    %10 = arith.mulf %7, %7 : vector<32x128xf32>
    %cst_6 = arith.constant dense<0.000000e+00> : vector<32xf32>
    %11 = vector.multi_reduction <add>, %10, %cst_6 [1] : vector<32x128xf32> to vector<32xf32>
    %12 = vector.shape_cast %11 : vector<32xf32> to vector<32x1xf32>
    %13 = tpu.concatenate %9, %12 in 1 : vector<32x1xf32>, vector<32x1xf32> -> vector<32x2xf32>
    %c1 = arith.constant 1 : index
    %c0_7 = arith.constant 0 : index
    %c0_8 = arith.constant 0 : index
    %14 = vector.load %arg3[%c1, %c0_7, %c0_8] : memref<4x32x128xf32, #tpu.memory_space<vmem>>, vector<1x32x128xf32>
    %15 = vector.shape_cast %14 : vector<1x32x128xf32> to vector<32x128xf32>
    %16 = arith.truncf %15 : vector<32x128xf32> to vector<32x128xbf16>
    %cst_9 = arith.constant dense<0.000000e+00> : vector<32x128xf32>
    %17 = tpu.matmul %3, %16, %cst_9 {dimension_numbers = #tpu.dot_dimension_numbers<[1], [0], [0], [1], [0, 0, 1, 1], [], []>} : vector<32x32xbf16>, vector<32x128xbf16>, vector<32x128xf32> -> vector<32x128xf32>
    %cst_10 = arith.constant dense<0.000000e+00> : vector<32xf32>
    %18 = vector.multi_reduction <add>, %17, %cst_10 [1] : vector<32x128xf32> to vector<32xf32>
    %19 = vector.shape_cast %18 : vector<32xf32> to vector<32x1xf32>
    %20 = arith.mulf %17, %17 : vector<32x128xf32>
    %cst_11 = arith.constant dense<0.000000e+00> : vector<32xf32>
    %21 = vector.multi_reduction <add>, %20, %cst_11 [1] : vector<32x128xf32> to vector<32xf32>
    %22 = vector.shape_cast %21 : vector<32xf32> to vector<32x1xf32>
    %23 = tpu.concatenate %19, %22 in 1 : vector<32x1xf32>, vector<32x1xf32> -> vector<32x2xf32>
    %c2 = arith.constant 2 : index
    %c0_12 = arith.constant 0 : index
    %c0_13 = arith.constant 0 : index
    %24 = vector.load %arg3[%c2, %c0_12, %c0_13] : memref<4x32x128xf32, #tpu.memory_space<vmem>>, vector<1x32x128xf32>
    %25 = vector.shape_cast %24 : vector<1x32x128xf32> to vector<32x128xf32>
    %26 = arith.truncf %25 : vector<32x128xf32> to vector<32x128xbf16>
    %cst_14 = arith.constant dense<0.000000e+00> : vector<32x128xf32>
    %27 = tpu.matmul %3, %26, %cst_14 {dimension_numbers = #tpu.dot_dimension_numbers<[1], [0], [0], [1], [0, 0, 1, 1], [], []>} : vector<32x32xbf16>, vector<32x128xbf16>, vector<32x128xf32> -> vector<32x128xf32>
    %cst_15 = arith.constant dense<0.000000e+00> : vector<32xf32>
    %28 = vector.multi_reduction <add>, %27, %cst_15 [1] : vector<32x128xf32> to vector<32xf32>
    %29 = vector.shape_cast %28 : vector<32xf32> to vector<32x1xf32>
    %30 = arith.mulf %27, %27 : vector<32x128xf32>
    %cst_16 = arith.constant dense<0.000000e+00> : vector<32xf32>
    %31 = vector.multi_reduction <add>, %30, %cst_16 [1] : vector<32x128xf32> to vector<32xf32>
    %32 = vector.shape_cast %31 : vector<32xf32> to vector<32x1xf32>
    %33 = tpu.concatenate %29, %32 in 1 : vector<32x1xf32>, vector<32x1xf32> -> vector<32x2xf32>
    %c3 = arith.constant 3 : index
    %c0_17 = arith.constant 0 : index
    %c0_18 = arith.constant 0 : index
    %34 = vector.load %arg3[%c3, %c0_17, %c0_18] : memref<4x32x128xf32, #tpu.memory_space<vmem>>, vector<1x32x128xf32>
    %35 = vector.shape_cast %34 : vector<1x32x128xf32> to vector<32x128xf32>
    %36 = arith.truncf %35 : vector<32x128xf32> to vector<32x128xbf16>
    %cst_19 = arith.constant dense<0.000000e+00> : vector<32x128xf32>
    %37 = tpu.matmul %3, %36, %cst_19 {dimension_numbers = #tpu.dot_dimension_numbers<[1], [0], [0], [1], [0, 0, 1, 1], [], []>} : vector<32x32xbf16>, vector<32x128xbf16>, vector<32x128xf32> -> vector<32x128xf32>
    %cst_20 = arith.constant dense<0.000000e+00> : vector<32xf32>
    %38 = vector.multi_reduction <add>, %37, %cst_20 [1] : vector<32x128xf32> to vector<32xf32>
    %39 = vector.shape_cast %38 : vector<32xf32> to vector<32x1xf32>
    %40 = arith.mulf %37, %37 : vector<32x128xf32>
    %cst_21 = arith.constant dense<0.000000e+00> : vector<32xf32>
    %41 = vector.multi_reduction <add>, %40, %cst_21 [1] : vector<32x128xf32> to vector<32xf32>
    %42 = vector.shape_cast %41 : vector<32xf32> to vector<32x1xf32>
    %43 = tpu.concatenate %39, %42 in 1 : vector<32x1xf32>, vector<32x1xf32> -> vector<32x2xf32>
    %c0_22 = arith.constant 0 : index
    %c0_23 = arith.constant 0 : index
    %c0_24 = arith.constant 0 : index
    %c0_25 = arith.constant 0 : index
    %44 = vector.load %arg5[%c0_22, %c0_23, %c0_24, %c0_25] : memref<4x1x32x2xf32, #tpu.memory_space<vmem>>, vector<4x1x32x2xf32>
    %45 = vector.shape_cast %13 : vector<32x2xf32> to vector<1x32x2xf32>
    %46 = vector.shape_cast %23 : vector<32x2xf32> to vector<1x32x2xf32>
    %47 = vector.shape_cast %33 : vector<32x2xf32> to vector<1x32x2xf32>
    %48 = vector.shape_cast %43 : vector<32x2xf32> to vector<1x32x2xf32>
    %49 = tpu.concatenate %45, %46, %47, %48 in 0 : vector<1x32x2xf32>, vector<1x32x2xf32>, vector<1x32x2xf32>, vector<1x32x2xf32> -> vector<4x32x2xf32>
    %50 = vector.shape_cast %49 : vector<4x32x2xf32> to vector<4x1x32x2xf32>
    %51 = arith.addf %44, %50 : vector<4x1x32x2xf32>
    %c0_26 = arith.constant 0 : index
    %c0_27 = arith.constant 0 : index
    %c0_28 = arith.constant 0 : index
    %c0_29 = arith.constant 0 : index
    %52 = vector.load %arg5[%c0_26, %c0_27, %c0_28, %c0_29] : memref<4x1x32x2xf32, #tpu.memory_space<vmem>>, vector<4x1x32x2xf32>
    tpu.vector_store %arg5[%c0_26, %c0_27, %c0_28, %c0_29], %51 {strides = array<i32>} : memref<4x1x32x2xf32, #tpu.memory_space<vmem>>, vector<4x1x32x2xf32>,
    return
  }
  func.func @transform_0(%arg0: i32, %arg1: i32, %arg2: i32) -> (i32, i32, i32) {
    %c1_i32 = arith.constant 1 : i32
    %0 = arith.muli %arg1, %c1_i32 : i32
    %1 = arith.addi %0, %arg2 : i32
    %c0_i32 = arith.constant 0 : i32
    %c0_i32_0 = arith.constant 0 : i32
    return %arg0, %c0_i32, %1 : i32, i32, i32
  }
  func.func @transform_1(%arg0: i32, %arg1: i32, %arg2: i32) -> (i32, i32) {
    %c0_i32 = arith.constant 0 : i32
    %c0_i32_0 = arith.constant 0 : i32
    %c0_i32_1 = arith.constant 0 : i32
    return %c0_i32, %c0_i32_0 : i32, i32
  }
  func.func @transform_2(%arg0: i32, %arg1: i32, %arg2: i32) -> (i32, i32, i32, i32) {
    %c0_i32 = arith.constant 0 : i32
    %c0_i32_0 = arith.constant 0 : i32
    %c0_i32_1 = arith.constant 0 : i32
    return %arg0, %arg1, %c0_i32, %c0_i32_0 : i32, i32, i32, i32
  }
}

module attributes {stable_mosaic.version = 11 : i64} {
  func.func @_stats2_kernel(%arg0: i32, %arg1: i32, %arg2: i32, %arg3: memref<4x32x128xf32, #tpu.memory_space<vmem>>, %arg4: memref<32x32xbf16, #tpu.memory_space<vmem>>, %arg5: memref<32x32xbf16, #tpu.memory_space<vmem>>, %arg6: memref<32x1xf32, #tpu.memory_space<vmem>>, %arg7: memref<32x1xf32, #tpu.memory_space<vmem>>, %arg8: memref<4x1x32x2xf32, #tpu.memory_space<vmem>>) attributes {dimension_semantics = [#tpu.dimension_semantics<parallel>, #tpu.dimension_semantics<parallel>, #tpu.dimension_semantics<arbitrary>], iteration_bounds = array<i64: 1, 1, 1>, scalar_prefetch = 0 : i64, scratch_operands = 0 : i64, tpu.core_type = #tpu.core_type<tc>, window_params = [{transform_indices = @transform_0, window_bounds = array<i64: 4, 32, 128>}, {pipeline_mode = #tpu.pipeline_mode<synchronous>, transform_indices = @transform_1, window_bounds = array<i64: 32, 32>}, {pipeline_mode = #tpu.pipeline_mode<synchronous>, transform_indices = @transform_2, window_bounds = array<i64: 32, 32>}, {pipeline_mode = #tpu.pipeline_mode<synchronous>, transform_indices = @transform_3, window_bounds = array<i64: 32, 1>}, {pipeline_mode = #tpu.pipeline_mode<synchronous>, transform_indices = @transform_4, window_bounds = array<i64: 32, 1>}, {transform_indices = @transform_5, window_bounds = array<i64: 4, 1, 32, 2>}]} {
    %c0_i32 = arith.constant 0 : i32
    %0 = arith.cmpi eq, %arg2, %c0_i32 : i32
    %1 = arith.extui %0 : i1 to i32
    %c0_i32_0 = arith.constant 0 : i32
    %2 = arith.cmpi ne, %1, %c0_i32_0 : i32
    scf.if %2 {
      %cst_44 = arith.constant 0.000000e+00 : f32
      %88 = vector.broadcast %cst_44 : f32 to vector<4x1x32x2xf32>
      %c0_45 = arith.constant 0 : index
      %c0_46 = arith.constant 0 : index
      %c0_47 = arith.constant 0 : index
      %c0_48 = arith.constant 0 : index
      %89 = vector.load %arg8[%c0_45, %c0_46, %c0_47, %c0_48] : memref<4x1x32x2xf32, #tpu.memory_space<vmem>>, vector<4x1x32x2xf32>
      tpu.vector_store %arg8[%c0_45, %c0_46, %c0_47, %c0_48], %88 {strides = array<i32>} : memref<4x1x32x2xf32, #tpu.memory_space<vmem>>, vector<4x1x32x2xf32>,
    } else {
    }
    %c0 = arith.constant 0 : index
    %c0_1 = arith.constant 0 : index
    %3 = vector.load %arg4[%c0, %c0_1] : memref<32x32xbf16, #tpu.memory_space<vmem>>, vector<32x32xbf16>
    %c0_2 = arith.constant 0 : index
    %c0_3 = arith.constant 0 : index
    %4 = vector.load %arg5[%c0_2, %c0_3] : memref<32x32xbf16, #tpu.memory_space<vmem>>, vector<32x32xbf16>
    %c0_4 = arith.constant 0 : index
    %c0_5 = arith.constant 0 : index
    %5 = vector.load %arg6[%c0_4, %c0_5] : memref<32x1xf32, #tpu.memory_space<vmem>>, vector<32x1xf32>
    %c0_6 = arith.constant 0 : index
    %c0_7 = arith.constant 0 : index
    %6 = vector.load %arg7[%c0_6, %c0_7] : memref<32x1xf32, #tpu.memory_space<vmem>>, vector<32x1xf32>
    %c0_8 = arith.constant 0 : index
    %c0_9 = arith.constant 0 : index
    %c0_10 = arith.constant 0 : index
    %7 = vector.load %arg3[%c0_8, %c0_9, %c0_10] : memref<4x32x128xf32, #tpu.memory_space<vmem>>, vector<1x32x128xf32>
    %8 = vector.shape_cast %7 : vector<1x32x128xf32> to vector<32x128xf32>
    %9 = arith.truncf %8 : vector<32x128xf32> to vector<32x128xbf16>
    %cst = arith.constant dense<0.000000e+00> : vector<32x128xf32>
    %10 = tpu.matmul %3, %9, %cst {dimension_numbers = #tpu.dot_dimension_numbers<[1], [0], [0], [1], [0, 0, 1, 1], [], []>} : vector<32x32xbf16>, vector<32x128xbf16>, vector<32x128xf32> -> vector<32x128xf32>
    %11 = vector.broadcast %5 : vector<32x1xf32> to vector<32x128xf32>
    %12 = arith.mulf %10, %11 : vector<32x128xf32>
    %13 = vector.broadcast %6 : vector<32x1xf32> to vector<32x128xf32>
    %14 = arith.addf %12, %13 : vector<32x128xf32>
    %cst_11 = arith.constant 0.000000e+00 : f32
    %15 = vector.broadcast %cst_11 : f32 to vector<32x128xf32>
    %16 = arith.maximumf %14, %15 : vector<32x128xf32>
    %17 = arith.truncf %16 : vector<32x128xf32> to vector<32x128xbf16>
    %cst_12 = arith.constant dense<0.000000e+00> : vector<32x128xf32>
    %18 = tpu.matmul %4, %17, %cst_12 {dimension_numbers = #tpu.dot_dimension_numbers<[1], [0], [0], [1], [0, 0, 1, 1], [], []>} : vector<32x32xbf16>, vector<32x128xbf16>, vector<32x128xf32> -> vector<32x128xf32>
    %cst_13 = arith.constant dense<0.000000e+00> : vector<32xf32>
    %19 = vector.multi_reduction <add>, %18, %cst_13 [1] : vector<32x128xf32> to vector<32xf32>
    %20 = vector.shape_cast %19 : vector<32xf32> to vector<32x1xf32>
    %21 = arith.mulf %18, %18 : vector<32x128xf32>
    %cst_14 = arith.constant dense<0.000000e+00> : vector<32xf32>
    %22 = vector.multi_reduction <add>, %21, %cst_14 [1] : vector<32x128xf32> to vector<32xf32>
    %23 = vector.shape_cast %22 : vector<32xf32> to vector<32x1xf32>
    %24 = tpu.concatenate %20, %23 in 1 : vector<32x1xf32>, vector<32x1xf32> -> vector<32x2xf32>
    %c1 = arith.constant 1 : index
    %c0_15 = arith.constant 0 : index
    %c0_16 = arith.constant 0 : index
    %25 = vector.load %arg3[%c1, %c0_15, %c0_16] : memref<4x32x128xf32, #tpu.memory_space<vmem>>, vector<1x32x128xf32>
    %26 = vector.shape_cast %25 : vector<1x32x128xf32> to vector<32x128xf32>
    %27 = arith.truncf %26 : vector<32x128xf32> to vector<32x128xbf16>
    %cst_17 = arith.constant dense<0.000000e+00> : vector<32x128xf32>
    %28 = tpu.matmul %3, %27, %cst_17 {dimension_numbers = #tpu.dot_dimension_numbers<[1], [0], [0], [1], [0, 0, 1, 1], [], []>} : vector<32x32xbf16>, vector<32x128xbf16>, vector<32x128xf32> -> vector<32x128xf32>
    %29 = vector.broadcast %5 : vector<32x1xf32> to vector<32x128xf32>
    %30 = arith.mulf %28, %29 : vector<32x128xf32>
    %31 = vector.broadcast %6 : vector<32x1xf32> to vector<32x128xf32>
    %32 = arith.addf %30, %31 : vector<32x128xf32>
    %cst_18 = arith.constant 0.000000e+00 : f32
    %33 = vector.broadcast %cst_18 : f32 to vector<32x128xf32>
    %34 = arith.maximumf %32, %33 : vector<32x128xf32>
    %35 = arith.truncf %34 : vector<32x128xf32> to vector<32x128xbf16>
    %cst_19 = arith.constant dense<0.000000e+00> : vector<32x128xf32>
    %36 = tpu.matmul %4, %35, %cst_19 {dimension_numbers = #tpu.dot_dimension_numbers<[1], [0], [0], [1], [0, 0, 1, 1], [], []>} : vector<32x32xbf16>, vector<32x128xbf16>, vector<32x128xf32> -> vector<32x128xf32>
    %cst_20 = arith.constant dense<0.000000e+00> : vector<32xf32>
    %37 = vector.multi_reduction <add>, %36, %cst_20 [1] : vector<32x128xf32> to vector<32xf32>
    %38 = vector.shape_cast %37 : vector<32xf32> to vector<32x1xf32>
    %39 = arith.mulf %36, %36 : vector<32x128xf32>
    %cst_21 = arith.constant dense<0.000000e+00> : vector<32xf32>
    %40 = vector.multi_reduction <add>, %39, %cst_21 [1] : vector<32x128xf32> to vector<32xf32>
    %41 = vector.shape_cast %40 : vector<32xf32> to vector<32x1xf32>
    %42 = tpu.concatenate %38, %41 in 1 : vector<32x1xf32>, vector<32x1xf32> -> vector<32x2xf32>
    %c2 = arith.constant 2 : index
    %c0_22 = arith.constant 0 : index
    %c0_23 = arith.constant 0 : index
    %43 = vector.load %arg3[%c2, %c0_22, %c0_23] : memref<4x32x128xf32, #tpu.memory_space<vmem>>, vector<1x32x128xf32>
    %44 = vector.shape_cast %43 : vector<1x32x128xf32> to vector<32x128xf32>
    %45 = arith.truncf %44 : vector<32x128xf32> to vector<32x128xbf16>
    %cst_24 = arith.constant dense<0.000000e+00> : vector<32x128xf32>
    %46 = tpu.matmul %3, %45, %cst_24 {dimension_numbers = #tpu.dot_dimension_numbers<[1], [0], [0], [1], [0, 0, 1, 1], [], []>} : vector<32x32xbf16>, vector<32x128xbf16>, vector<32x128xf32> -> vector<32x128xf32>
    %47 = vector.broadcast %5 : vector<32x1xf32> to vector<32x128xf32>
    %48 = arith.mulf %46, %47 : vector<32x128xf32>
    %49 = vector.broadcast %6 : vector<32x1xf32> to vector<32x128xf32>
    %50 = arith.addf %48, %49 : vector<32x128xf32>
    %cst_25 = arith.constant 0.000000e+00 : f32
    %51 = vector.broadcast %cst_25 : f32 to vector<32x128xf32>
    %52 = arith.maximumf %50, %51 : vector<32x128xf32>
    %53 = arith.truncf %52 : vector<32x128xf32> to vector<32x128xbf16>
    %cst_26 = arith.constant dense<0.000000e+00> : vector<32x128xf32>
    %54 = tpu.matmul %4, %53, %cst_26 {dimension_numbers = #tpu.dot_dimension_numbers<[1], [0], [0], [1], [0, 0, 1, 1], [], []>} : vector<32x32xbf16>, vector<32x128xbf16>, vector<32x128xf32> -> vector<32x128xf32>
    %cst_27 = arith.constant dense<0.000000e+00> : vector<32xf32>
    %55 = vector.multi_reduction <add>, %54, %cst_27 [1] : vector<32x128xf32> to vector<32xf32>
    %56 = vector.shape_cast %55 : vector<32xf32> to vector<32x1xf32>
    %57 = arith.mulf %54, %54 : vector<32x128xf32>
    %cst_28 = arith.constant dense<0.000000e+00> : vector<32xf32>
    %58 = vector.multi_reduction <add>, %57, %cst_28 [1] : vector<32x128xf32> to vector<32xf32>
    %59 = vector.shape_cast %58 : vector<32xf32> to vector<32x1xf32>
    %60 = tpu.concatenate %56, %59 in 1 : vector<32x1xf32>, vector<32x1xf32> -> vector<32x2xf32>
    %c3 = arith.constant 3 : index
    %c0_29 = arith.constant 0 : index
    %c0_30 = arith.constant 0 : index
    %61 = vector.load %arg3[%c3, %c0_29, %c0_30] : memref<4x32x128xf32, #tpu.memory_space<vmem>>, vector<1x32x128xf32>
    %62 = vector.shape_cast %61 : vector<1x32x128xf32> to vector<32x128xf32>
    %63 = arith.truncf %62 : vector<32x128xf32> to vector<32x128xbf16>
    %cst_31 = arith.constant dense<0.000000e+00> : vector<32x128xf32>
    %64 = tpu.matmul %3, %63, %cst_31 {dimension_numbers = #tpu.dot_dimension_numbers<[1], [0], [0], [1], [0, 0, 1, 1], [], []>} : vector<32x32xbf16>, vector<32x128xbf16>, vector<32x128xf32> -> vector<32x128xf32>
    %65 = vector.broadcast %5 : vector<32x1xf32> to vector<32x128xf32>
    %66 = arith.mulf %64, %65 : vector<32x128xf32>
    %67 = vector.broadcast %6 : vector<32x1xf32> to vector<32x128xf32>
    %68 = arith.addf %66, %67 : vector<32x128xf32>
    %cst_32 = arith.constant 0.000000e+00 : f32
    %69 = vector.broadcast %cst_32 : f32 to vector<32x128xf32>
    %70 = arith.maximumf %68, %69 : vector<32x128xf32>
    %71 = arith.truncf %70 : vector<32x128xf32> to vector<32x128xbf16>
    %cst_33 = arith.constant dense<0.000000e+00> : vector<32x128xf32>
    %72 = tpu.matmul %4, %71, %cst_33 {dimension_numbers = #tpu.dot_dimension_numbers<[1], [0], [0], [1], [0, 0, 1, 1], [], []>} : vector<32x32xbf16>, vector<32x128xbf16>, vector<32x128xf32> -> vector<32x128xf32>
    %cst_34 = arith.constant dense<0.000000e+00> : vector<32xf32>
    %73 = vector.multi_reduction <add>, %72, %cst_34 [1] : vector<32x128xf32> to vector<32xf32>
    %74 = vector.shape_cast %73 : vector<32xf32> to vector<32x1xf32>
    %75 = arith.mulf %72, %72 : vector<32x128xf32>
    %cst_35 = arith.constant dense<0.000000e+00> : vector<32xf32>
    %76 = vector.multi_reduction <add>, %75, %cst_35 [1] : vector<32x128xf32> to vector<32xf32>
    %77 = vector.shape_cast %76 : vector<32xf32> to vector<32x1xf32>
    %78 = tpu.concatenate %74, %77 in 1 : vector<32x1xf32>, vector<32x1xf32> -> vector<32x2xf32>
    %c0_36 = arith.constant 0 : index
    %c0_37 = arith.constant 0 : index
    %c0_38 = arith.constant 0 : index
    %c0_39 = arith.constant 0 : index
    %79 = vector.load %arg8[%c0_36, %c0_37, %c0_38, %c0_39] : memref<4x1x32x2xf32, #tpu.memory_space<vmem>>, vector<4x1x32x2xf32>
    %80 = vector.shape_cast %24 : vector<32x2xf32> to vector<1x32x2xf32>
    %81 = vector.shape_cast %42 : vector<32x2xf32> to vector<1x32x2xf32>
    %82 = vector.shape_cast %60 : vector<32x2xf32> to vector<1x32x2xf32>
    %83 = vector.shape_cast %78 : vector<32x2xf32> to vector<1x32x2xf32>
    %84 = tpu.concatenate %80, %81, %82, %83 in 0 : vector<1x32x2xf32>, vector<1x32x2xf32>, vector<1x32x2xf32>, vector<1x32x2xf32> -> vector<4x32x2xf32>
    %85 = vector.shape_cast %84 : vector<4x32x2xf32> to vector<4x1x32x2xf32>
    %86 = arith.addf %79, %85 : vector<4x1x32x2xf32>
    %c0_40 = arith.constant 0 : index
    %c0_41 = arith.constant 0 : index
    %c0_42 = arith.constant 0 : index
    %c0_43 = arith.constant 0 : index
    %87 = vector.load %arg8[%c0_40, %c0_41, %c0_42, %c0_43] : memref<4x1x32x2xf32, #tpu.memory_space<vmem>>, vector<4x1x32x2xf32>
    tpu.vector_store %arg8[%c0_40, %c0_41, %c0_42, %c0_43], %86 {strides = array<i32>} : memref<4x1x32x2xf32, #tpu.memory_space<vmem>>, vector<4x1x32x2xf32>,
    return
  }
  func.func @transform_0(%arg0: i32, %arg1: i32, %arg2: i32) -> (i32, i32, i32) {
    %c1_i32 = arith.constant 1 : i32
    %0 = arith.muli %arg1, %c1_i32 : i32
    %1 = arith.addi %0, %arg2 : i32
    %c0_i32 = arith.constant 0 : i32
    %c0_i32_0 = arith.constant 0 : i32
    return %arg0, %c0_i32, %1 : i32, i32, i32
  }
  func.func @transform_1(%arg0: i32, %arg1: i32, %arg2: i32) -> (i32, i32) {
    %c0_i32 = arith.constant 0 : i32
    %c0_i32_0 = arith.constant 0 : i32
    %c0_i32_1 = arith.constant 0 : i32
    return %c0_i32, %c0_i32_0 : i32, i32
  }
  func.func @transform_2(%arg0: i32, %arg1: i32, %arg2: i32) -> (i32, i32) {
    %c0_i32 = arith.constant 0 : i32
    %c0_i32_0 = arith.constant 0 : i32
    %c0_i32_1 = arith.constant 0 : i32
    return %c0_i32, %c0_i32_0 : i32, i32
  }
  func.func @transform_3(%arg0: i32, %arg1: i32, %arg2: i32) -> (i32, i32) {
    %c0_i32 = arith.constant 0 : i32
    %c0_i32_0 = arith.constant 0 : i32
    %c0_i32_1 = arith.constant 0 : i32
    return %c0_i32, %c0_i32_0 : i32, i32
  }
  func.func @transform_4(%arg0: i32, %arg1: i32, %arg2: i32) -> (i32, i32) {
    %c0_i32 = arith.constant 0 : i32
    %c0_i32_0 = arith.constant 0 : i32
    %c0_i32_1 = arith.constant 0 : i32
    return %c0_i32, %c0_i32_0 : i32, i32
  }
  func.func @transform_5(%arg0: i32, %arg1: i32, %arg2: i32) -> (i32, i32, i32, i32) {
    %c0_i32 = arith.constant 0 : i32
    %c0_i32_0 = arith.constant 0 : i32
    %c0_i32_1 = arith.constant 0 : i32
    return %arg0, %arg1, %c0_i32, %c0_i32_0 : i32, i32, i32, i32
  }
}

module attributes {stable_mosaic.version = 11 : i64} {
  func.func @_final_kernel(%arg0: i32, %arg1: i32, %arg2: memref<4x32x128xf32, #tpu.memory_space<vmem>>, %arg3: memref<32x32xbf16, #tpu.memory_space<vmem>>, %arg4: memref<32x32xbf16, #tpu.memory_space<vmem>>, %arg5: memref<32x1xf32, #tpu.memory_space<vmem>>, %arg6: memref<32x1xf32, #tpu.memory_space<vmem>>, %arg7: memref<32x1xf32, #tpu.memory_space<vmem>>, %arg8: memref<32x1xf32, #tpu.memory_space<vmem>>, %arg9: memref<4x32x1xf32, #tpu.memory_space<vmem>>, %arg10: memref<4x32x128xf32, #tpu.memory_space<vmem>>) attributes {dimension_semantics = [#tpu.dimension_semantics<parallel>, #tpu.dimension_semantics<parallel>], iteration_bounds = array<i64: 1, 1>, scalar_prefetch = 0 : i64, scratch_operands = 0 : i64, tpu.core_type = #tpu.core_type<tc>, window_params = [{transform_indices = @transform_0, window_bounds = array<i64: 4, 32, 128>}, {pipeline_mode = #tpu.pipeline_mode<synchronous>, transform_indices = @transform_1, window_bounds = array<i64: 32, 32>}, {pipeline_mode = #tpu.pipeline_mode<synchronous>, transform_indices = @transform_2, window_bounds = array<i64: 32, 32>}, {pipeline_mode = #tpu.pipeline_mode<synchronous>, transform_indices = @transform_3, window_bounds = array<i64: 32, 1>}, {pipeline_mode = #tpu.pipeline_mode<synchronous>, transform_indices = @transform_4, window_bounds = array<i64: 32, 1>}, {pipeline_mode = #tpu.pipeline_mode<synchronous>, transform_indices = @transform_5, window_bounds = array<i64: 32, 1>}, {pipeline_mode = #tpu.pipeline_mode<synchronous>, transform_indices = @transform_6, window_bounds = array<i64: 32, 1>}, {transform_indices = @transform_7, window_bounds = array<i64: 4, 32, 1>}, {transform_indices = @transform_8, window_bounds = array<i64: 4, 32, 128>}]} {
    %c0 = arith.constant 0 : index
    %c0_0 = arith.constant 0 : index
    %0 = vector.load %arg3[%c0, %c0_0] : memref<32x32xbf16, #tpu.memory_space<vmem>>, vector<32x32xbf16>
    %c0_1 = arith.constant 0 : index
    %c0_2 = arith.constant 0 : index
    %1 = vector.load %arg4[%c0_1, %c0_2] : memref<32x32xbf16, #tpu.memory_space<vmem>>, vector<32x32xbf16>
    %c0_3 = arith.constant 0 : index
    %c0_4 = arith.constant 0 : index
    %2 = vector.load %arg5[%c0_3, %c0_4] : memref<32x1xf32, #tpu.memory_space<vmem>>, vector<32x1xf32>
    %c0_5 = arith.constant 0 : index
    %c0_6 = arith.constant 0 : index
    %3 = vector.load %arg6[%c0_5, %c0_6] : memref<32x1xf32, #tpu.memory_space<vmem>>, vector<32x1xf32>
    %c0_7 = arith.constant 0 : index
    %c0_8 = arith.constant 0 : index
    %4 = vector.load %arg7[%c0_7, %c0_8] : memref<32x1xf32, #tpu.memory_space<vmem>>, vector<32x1xf32>
    %c0_9 = arith.constant 0 : index
    %c0_10 = arith.constant 0 : index
    %5 = vector.load %arg8[%c0_9, %c0_10] : memref<32x1xf32, #tpu.memory_space<vmem>>, vector<32x1xf32>
    %c0_11 = arith.constant 0 : index
    %c0_12 = arith.constant 0 : index
    %c0_13 = arith.constant 0 : index
    %6 = vector.load %arg2[%c0_11, %c0_12, %c0_13] : memref<4x32x128xf32, #tpu.memory_space<vmem>>, vector<1x32x128xf32>
    %7 = vector.shape_cast %6 : vector<1x32x128xf32> to vector<32x128xf32>
    %8 = arith.truncf %7 : vector<32x128xf32> to vector<32x128xbf16>
    %cst = arith.constant dense<0.000000e+00> : vector<32x128xf32>
    %9 = tpu.matmul %0, %8, %cst {dimension_numbers = #tpu.dot_dimension_numbers<[1], [0], [0], [1], [0, 0, 1, 1], [], []>} : vector<32x32xbf16>, vector<32x128xbf16>, vector<32x128xf32> -> vector<32x128xf32>
    %10 = vector.broadcast %2 : vector<32x1xf32> to vector<32x128xf32>
    %11 = arith.mulf %9, %10 : vector<32x128xf32>
    %12 = vector.broadcast %3 : vector<32x1xf32> to vector<32x128xf32>
    %13 = arith.addf %11, %12 : vector<32x128xf32>
    %cst_14 = arith.constant 0.000000e+00 : f32
    %14 = vector.broadcast %cst_14 : f32 to vector<32x128xf32>
    %15 = arith.maximumf %13, %14 : vector<32x128xf32>
    %16 = arith.truncf %15 : vector<32x128xf32> to vector<32x128xbf16>
    %cst_15 = arith.constant dense<0.000000e+00> : vector<32x128xf32>
    %17 = tpu.matmul %1, %16, %cst_15 {dimension_numbers = #tpu.dot_dimension_numbers<[1], [0], [0], [1], [0, 0, 1, 1], [], []>} : vector<32x32xbf16>, vector<32x128xbf16>, vector<32x128xf32> -> vector<32x128xf32>
    %18 = vector.broadcast %4 : vector<32x1xf32> to vector<32x128xf32>
    %19 = arith.mulf %17, %18 : vector<32x128xf32>
    %20 = vector.broadcast %5 : vector<32x1xf32> to vector<32x128xf32>
    %21 = arith.addf %19, %20 : vector<32x128xf32>
    %c0_16 = arith.constant 0 : index
    %c0_17 = arith.constant 0 : index
    %c0_18 = arith.constant 0 : index
    %22 = vector.load %arg9[%c0_16, %c0_17, %c0_18] : memref<4x32x1xf32, #tpu.memory_space<vmem>>, vector<1x32x1xf32>
    %23 = vector.shape_cast %22 : vector<1x32x1xf32> to vector<32x1xf32>
    %24 = vector.broadcast %23 : vector<32x1xf32> to vector<32x128xf32>
    %25 = arith.mulf %21, %24 : vector<32x128xf32>
    %26 = arith.addf %25, %7 : vector<32x128xf32>
    %cst_19 = arith.constant 0.000000e+00 : f32
    %27 = vector.broadcast %cst_19 : f32 to vector<32x128xf32>
    %28 = arith.maximumf %26, %27 : vector<32x128xf32>
    %c0_20 = arith.constant 0 : index
    %c0_21 = arith.constant 0 : index
    %c0_22 = arith.constant 0 : index
    %29 = vector.load %arg10[%c0_20, %c0_21, %c0_22] : memref<4x32x128xf32, #tpu.memory_space<vmem>>, vector<1x32x128xf32>
    %30 = vector.shape_cast %29 : vector<1x32x128xf32> to vector<32x128xf32>
    %31 = vector.shape_cast %28 : vector<32x128xf32> to vector<1x32x128xf32>
    tpu.vector_store %arg10[%c0_20, %c0_21, %c0_22], %31 {strides = array<i32>} : memref<4x32x128xf32, #tpu.memory_space<vmem>>, vector<1x32x128xf32>,
    %c1 = arith.constant 1 : index
    %c0_23 = arith.constant 0 : index
    %c0_24 = arith.constant 0 : index
    %32 = vector.load %arg2[%c1, %c0_23, %c0_24] : memref<4x32x128xf32, #tpu.memory_space<vmem>>, vector<1x32x128xf32>
    %33 = vector.shape_cast %32 : vector<1x32x128xf32> to vector<32x128xf32>
    %34 = arith.truncf %33 : vector<32x128xf32> to vector<32x128xbf16>
    %cst_25 = arith.constant dense<0.000000e+00> : vector<32x128xf32>
    %35 = tpu.matmul %0, %34, %cst_25 {dimension_numbers = #tpu.dot_dimension_numbers<[1], [0], [0], [1], [0, 0, 1, 1], [], []>} : vector<32x32xbf16>, vector<32x128xbf16>, vector<32x128xf32> -> vector<32x128xf32>
    %36 = vector.broadcast %2 : vector<32x1xf32> to vector<32x128xf32>
    %37 = arith.mulf %35, %36 : vector<32x128xf32>
    %38 = vector.broadcast %3 : vector<32x1xf32> to vector<32x128xf32>
    %39 = arith.addf %37, %38 : vector<32x128xf32>
    %cst_26 = arith.constant 0.000000e+00 : f32
    %40 = vector.broadcast %cst_26 : f32 to vector<32x128xf32>
    %41 = arith.maximumf %39, %40 : vector<32x128xf32>
    %42 = arith.truncf %41 : vector<32x128xf32> to vector<32x128xbf16>
    %cst_27 = arith.constant dense<0.000000e+00> : vector<32x128xf32>
    %43 = tpu.matmul %1, %42, %cst_27 {dimension_numbers = #tpu.dot_dimension_numbers<[1], [0], [0], [1], [0, 0, 1, 1], [], []>} : vector<32x32xbf16>, vector<32x128xbf16>, vector<32x128xf32> -> vector<32x128xf32>
    %44 = vector.broadcast %4 : vector<32x1xf32> to vector<32x128xf32>
    %45 = arith.mulf %43, %44 : vector<32x128xf32>
    %46 = vector.broadcast %5 : vector<32x1xf32> to vector<32x128xf32>
    %47 = arith.addf %45, %46 : vector<32x128xf32>
    %c1_28 = arith.constant 1 : index
    %c0_29 = arith.constant 0 : index
    %c0_30 = arith.constant 0 : index
    %48 = vector.load %arg9[%c1_28, %c0_29, %c0_30] : memref<4x32x1xf32, #tpu.memory_space<vmem>>, vector<1x32x1xf32>
    %49 = vector.shape_cast %48 : vector<1x32x1xf32> to vector<32x1xf32>
    %50 = vector.broadcast %49 : vector<32x1xf32> to vector<32x128xf32>
    %51 = arith.mulf %47, %50 : vector<32x128xf32>
    %52 = arith.addf %51, %33 : vector<32x128xf32>
    %cst_31 = arith.constant 0.000000e+00 : f32
    %53 = vector.broadcast %cst_31 : f32 to vector<32x128xf32>
    %54 = arith.maximumf %52, %53 : vector<32x128xf32>
    %c1_32 = arith.constant 1 : index
    %c0_33 = arith.constant 0 : index
    %c0_34 = arith.constant 0 : index
    %55 = vector.load %arg10[%c1_32, %c0_33, %c0_34] : memref<4x32x128xf32, #tpu.memory_space<vmem>>, vector<1x32x128xf32>
    %56 = vector.shape_cast %55 : vector<1x32x128xf32> to vector<32x128xf32>
    %57 = vector.shape_cast %54 : vector<32x128xf32> to vector<1x32x128xf32>
    tpu.vector_store %arg10[%c1_32, %c0_33, %c0_34], %57 {strides = array<i32>} : memref<4x32x128xf32, #tpu.memory_space<vmem>>, vector<1x32x128xf32>,
    %c2 = arith.constant 2 : index
    %c0_35 = arith.constant 0 : index
    %c0_36 = arith.constant 0 : index
    %58 = vector.load %arg2[%c2, %c0_35, %c0_36] : memref<4x32x128xf32, #tpu.memory_space<vmem>>, vector<1x32x128xf32>
    %59 = vector.shape_cast %58 : vector<1x32x128xf32> to vector<32x128xf32>
    %60 = arith.truncf %59 : vector<32x128xf32> to vector<32x128xbf16>
    %cst_37 = arith.constant dense<0.000000e+00> : vector<32x128xf32>
    %61 = tpu.matmul %0, %60, %cst_37 {dimension_numbers = #tpu.dot_dimension_numbers<[1], [0], [0], [1], [0, 0, 1, 1], [], []>} : vector<32x32xbf16>, vector<32x128xbf16>, vector<32x128xf32> -> vector<32x128xf32>
    %62 = vector.broadcast %2 : vector<32x1xf32> to vector<32x128xf32>
    %63 = arith.mulf %61, %62 : vector<32x128xf32>
    %64 = vector.broadcast %3 : vector<32x1xf32> to vector<32x128xf32>
    %65 = arith.addf %63, %64 : vector<32x128xf32>
    %cst_38 = arith.constant 0.000000e+00 : f32
    %66 = vector.broadcast %cst_38 : f32 to vector<32x128xf32>
    %67 = arith.maximumf %65, %66 : vector<32x128xf32>
    %68 = arith.truncf %67 : vector<32x128xf32> to vector<32x128xbf16>
    %cst_39 = arith.constant dense<0.000000e+00> : vector<32x128xf32>
    %69 = tpu.matmul %1, %68, %cst_39 {dimension_numbers = #tpu.dot_dimension_numbers<[1], [0], [0], [1], [0, 0, 1, 1], [], []>} : vector<32x32xbf16>, vector<32x128xbf16>, vector<32x128xf32> -> vector<32x128xf32>
    %70 = vector.broadcast %4 : vector<32x1xf32> to vector<32x128xf32>
    %71 = arith.mulf %69, %70 : vector<32x128xf32>
    %72 = vector.broadcast %5 : vector<32x1xf32> to vector<32x128xf32>
    %73 = arith.addf %71, %72 : vector<32x128xf32>
    %c2_40 = arith.constant 2 : index
    %c0_41 = arith.constant 0 : index
    %c0_42 = arith.constant 0 : index
    %74 = vector.load %arg9[%c2_40, %c0_41, %c0_42] : memref<4x32x1xf32, #tpu.memory_space<vmem>>, vector<1x32x1xf32>
    %75 = vector.shape_cast %74 : vector<1x32x1xf32> to vector<32x1xf32>
    %76 = vector.broadcast %75 : vector<32x1xf32> to vector<32x128xf32>
    %77 = arith.mulf %73, %76 : vector<32x128xf32>
    %78 = arith.addf %77, %59 : vector<32x128xf32>
    %cst_43 = arith.constant 0.000000e+00 : f32
    %79 = vector.broadcast %cst_43 : f32 to vector<32x128xf32>
    %80 = arith.maximumf %78, %79 : vector<32x128xf32>
    %c2_44 = arith.constant 2 : index
    %c0_45 = arith.constant 0 : index
    %c0_46 = arith.constant 0 : index
    %81 = vector.load %arg10[%c2_44, %c0_45, %c0_46] : memref<4x32x128xf32, #tpu.memory_space<vmem>>, vector<1x32x128xf32>
    %82 = vector.shape_cast %81 : vector<1x32x128xf32> to vector<32x128xf32>
    %83 = vector.shape_cast %80 : vector<32x128xf32> to vector<1x32x128xf32>
    tpu.vector_store %arg10[%c2_44, %c0_45, %c0_46], %83 {strides = array<i32>} : memref<4x32x128xf32, #tpu.memory_space<vmem>>, vector<1x32x128xf32>,
    %c3 = arith.constant 3 : index
    %c0_47 = arith.constant 0 : index
    %c0_48 = arith.constant 0 : index
    %84 = vector.load %arg2[%c3, %c0_47, %c0_48] : memref<4x32x128xf32, #tpu.memory_space<vmem>>, vector<1x32x128xf32>
    %85 = vector.shape_cast %84 : vector<1x32x128xf32> to vector<32x128xf32>
    %86 = arith.truncf %85 : vector<32x128xf32> to vector<32x128xbf16>
    %cst_49 = arith.constant dense<0.000000e+00> : vector<32x128xf32>
    %87 = tpu.matmul %0, %86, %cst_49 {dimension_numbers = #tpu.dot_dimension_numbers<[1], [0], [0], [1], [0, 0, 1, 1], [], []>} : vector<32x32xbf16>, vector<32x128xbf16>, vector<32x128xf32> -> vector<32x128xf32>
    %88 = vector.broadcast %2 : vector<32x1xf32> to vector<32x128xf32>
    %89 = arith.mulf %87, %88 : vector<32x128xf32>
    %90 = vector.broadcast %3 : vector<32x1xf32> to vector<32x128xf32>
    %91 = arith.addf %89, %90 : vector<32x128xf32>
    %cst_50 = arith.constant 0.000000e+00 : f32
    %92 = vector.broadcast %cst_50 : f32 to vector<32x128xf32>
    %93 = arith.maximumf %91, %92 : vector<32x128xf32>
    %94 = arith.truncf %93 : vector<32x128xf32> to vector<32x128xbf16>
    %cst_51 = arith.constant dense<0.000000e+00> : vector<32x128xf32>
    %95 = tpu.matmul %1, %94, %cst_51 {dimension_numbers = #tpu.dot_dimension_numbers<[1], [0], [0], [1], [0, 0, 1, 1], [], []>} : vector<32x32xbf16>, vector<32x128xbf16>, vector<32x128xf32> -> vector<32x128xf32>
    %96 = vector.broadcast %4 : vector<32x1xf32> to vector<32x128xf32>
    %97 = arith.mulf %95, %96 : vector<32x128xf32>
    %98 = vector.broadcast %5 : vector<32x1xf32> to vector<32x128xf32>
    %99 = arith.addf %97, %98 : vector<32x128xf32>
    %c3_52 = arith.constant 3 : index
    %c0_53 = arith.constant 0 : index
    %c0_54 = arith.constant 0 : index
    %100 = vector.load %arg9[%c3_52, %c0_53, %c0_54] : memref<4x32x1xf32, #tpu.memory_space<vmem>>, vector<1x32x1xf32>
    %101 = vector.shape_cast %100 : vector<1x32x1xf32> to vector<32x1xf32>
    %102 = vector.broadcast %101 : vector<32x1xf32> to vector<32x128xf32>
    %103 = arith.mulf %99, %102 : vector<32x128xf32>
    %104 = arith.addf %103, %85 : vector<32x128xf32>
    %cst_55 = arith.constant 0.000000e+00 : f32
    %105 = vector.broadcast %cst_55 : f32 to vector<32x128xf32>
    %106 = arith.maximumf %104, %105 : vector<32x128xf32>
    %c3_56 = arith.constant 3 : index
    %c0_57 = arith.constant 0 : index
    %c0_58 = arith.constant 0 : index
    %107 = vector.load %arg10[%c3_56, %c0_57, %c0_58] : memref<4x32x128xf32, #tpu.memory_space<vmem>>, vector<1x32x128xf32>
    %108 = vector.shape_cast %107 : vector<1x32x128xf32> to vector<32x128xf32>
    %109 = vector.shape_cast %106 : vector<32x128xf32> to vector<1x32x128xf32>
    tpu.vector_store %arg10[%c3_56, %c0_57, %c0_58], %109 {strides = array<i32>} : memref<4x32x128xf32, #tpu.memory_space<vmem>>, vector<1x32x128xf32>,
    return
  }
  func.func @transform_0(%arg0: i32, %arg1: i32) -> (i32, i32, i32) {
    %c0_i32 = arith.constant 0 : i32
    %c0_i32_0 = arith.constant 0 : i32
    return %arg0, %c0_i32, %arg1 : i32, i32, i32
  }
  func.func @transform_1(%arg0: i32, %arg1: i32) -> (i32, i32) {
    %c0_i32 = arith.constant 0 : i32
    %c0_i32_0 = arith.constant 0 : i32
    %c0_i32_1 = arith.constant 0 : i32
    return %c0_i32, %c0_i32_0 : i32, i32
  }
  func.func @transform_2(%arg0: i32, %arg1: i32) -> (i32, i32) {
    %c0_i32 = arith.constant 0 : i32
    %c0_i32_0 = arith.constant 0 : i32
    %c0_i32_1 = arith.constant 0 : i32
    return %c0_i32, %c0_i32_0 : i32, i32
  }
  func.func @transform_3(%arg0: i32, %arg1: i32) -> (i32, i32) {
    %c0_i32 = arith.constant 0 : i32
    %c0_i32_0 = arith.constant 0 : i32
    %c0_i32_1 = arith.constant 0 : i32
    return %c0_i32, %c0_i32_0 : i32, i32
  }
  func.func @transform_4(%arg0: i32, %arg1: i32) -> (i32, i32) {
    %c0_i32 = arith.constant 0 : i32
    %c0_i32_0 = arith.constant 0 : i32
    %c0_i32_1 = arith.constant 0 : i32
    return %c0_i32, %c0_i32_0 : i32, i32
  }
  func.func @transform_5(%arg0: i32, %arg1: i32) -> (i32, i32) {
    %c0_i32 = arith.constant 0 : i32
    %c0_i32_0 = arith.constant 0 : i32
    %c0_i32_1 = arith.constant 0 : i32
    return %c0_i32, %c0_i32_0 : i32, i32
  }
  func.func @transform_6(%arg0: i32, %arg1: i32) -> (i32, i32) {
    %c0_i32 = arith.constant 0 : i32
    %c0_i32_0 = arith.constant 0 : i32
    %c0_i32_1 = arith.constant 0 : i32
    return %c0_i32, %c0_i32_0 : i32, i32
  }
  func.func @transform_7(%arg0: i32, %arg1: i32) -> (i32, i32, i32) {
    %c0_i32 = arith.constant 0 : i32
    %c0_i32_0 = arith.constant 0 : i32
    %c0_i32_1 = arith.constant 0 : i32
    return %arg0, %c0_i32, %c0_i32_0 : i32, i32, i32
  }
  func.func @transform_8(%arg0: i32, %arg1: i32) -> (i32, i32, i32) {
    %c0_i32 = arith.constant 0 : i32
    %c0_i32_0 = arith.constant 0 : i32
    return %arg0, %c0_i32, %arg1 : i32, i32, i32
  }
}

</mosaic_0001>

<bundles_post_ra>
// kernel: se_basic_block.3
= control target key start
LH: loop header
LB: loop body
LE: loop exit
PB: predicated region body
PF: predicated region fallthrough
CT: control target
= control target key end

     0   :  { %7 = vsyncpa [#allocation3], 0  ;;  %s534_s9 = smov [#allocation2]   ;;  %s776_s0 = inlined_call_operand.hbm [shape: f32[4,32,128], index: 0, kind: input, shape index: {}]   ;;  %s777_s1 = inlined_call_operand.vmem [shape: bf16[32,32], index: 1, kind: input, shape index: {}]   ;;  %s778_s2 = inlined_call_operand.vmem [shape: f32[4,1,32,2], index: 2, kind: output, shape index: {}]  }
   0x1   :  { %s16_s10 = sshll.u32 %s534_s9, 4  ;;  %s510_s13 = scalar_lea.hbm %s776_s0, 2048  ;;  %s17_s10 = int_to_ptr.vmem [resolvable:$true] %s16_s10 }
   0x2   :  { %p511_p0 = scmp.ne.s32.totalorder %s776_s0, %s510_s13  ;;  %p514_p1 = scmp.lt.u32.totalorder %s510_s13, %s776_s0 }
   0x4   :  { %p516_p2 = pnand %p514_p1, %p511_p0 }
   0x6   :  { %519 = shalt.err (!%p516_p2)
}
   0x7   :  { %s520_s18 = scalar_lea.vmem %s17_s10, 2048  ;;  %p525_p4 = scmp.lt.s32.totalorder %s17_s10, %s17_s10 }
   0x8   :  { %p521_p3 = scmp.ne.s32.totalorder %s17_s10, %s520_s18  ;;  %p526_p5 = scmp.lt.s32.totalorder %s520_s18, %s520_s18 }
   0xa   :  { %p527_p6 = por %p526_p5, %p525_p4 }
   0xc   :  { %p528_p7 = pnand %p527_p6, %p521_p3 }
   0xe   :  { %531 = shalt.err (!%p528_p7)
}
   0xf   :  { %s535_s19 = smov 128   ;;  %s536_s20 = smov 8  }
  0x10   :  { %22 = dma.hbm_to_vmem [thread:$0]  %s776_s0, 2048, %s17_s10, [#allocation3], %s535_s19, %s535_s19, %s536_s20  }
  0x11   :  { %532 = dma.done.wait [#allocation3], 2048  }
  0x12   :  { %533 = vsyncadd [#allocation3], 4294965248  ;;  %v55_v0 = vld [vmem:[#allocation2] sm:$0xff]  ;;  %v56_v1 = vld [vmem:[#allocation2 + $0x8] sm:$0xff]  ;;  %vm71_vm0 = vcmask 261120   ;;  %vm34_vm1 = vcmask 15360  }
  0x13   :  { %v153_v2 = vld [vmem:[#allocation2 + $0x20] sm:$0xff]  ;;  %v59_v3 = vpack.c.bf16 %v56_v1, %v55_v0  ;;  %v154_v4 = vld [vmem:[#allocation2 + $0x28] sm:$0xff]  ;;  %v57_v5 = vld [vmem:[#allocation2 + $0x10] sm:$0xff]  ;;  %v537_v46 = vmov 0.0   ;;  %vm147_vm2 = vcmask 7168  }
  0x14   :  { %v58_v6 = vld [vmem:[#allocation2 + $0x18] sm:$0xff]  ;;  %v157_v7 = vpack.c.bf16 %v154_v4, %v153_v2  ;;  %v155_v9 = vld [vmem:[#allocation2 + $0x30] sm:$0xff]  ;;  %v233_v13 = vld [vmem:[#allocation2 + $0x40] sm:$0xff]  ;;  %37 = vst.msk [vmem:[%s778_s2 + $0x10] sm:$0xff] %vm34_vm1, %v537_v46 }
  0x15   :  { %v60_v8 = vpack.c.bf16 %v58_v6, %v57_v5  ;;  %v156_v10 = vld [vmem:[#allocation2 + $0x38] sm:$0xff]  ;;  %472 = vmatprep.subr.bf16.mxu0 %v59_v3  ;;  %v234_v14 = vld [vmem:[#allocation2 + $0x48] sm:$0xff]  ;;  %v235_v15 = vld [vmem:[#allocation2 + $0x50] sm:$0xff]  ;;  %35 = vst.msk [vmem:[%s778_s2] sm:$0xff] %vm34_vm1, %v537_v46 }
  0x16   :  { %v158_v11 = vpack.c.bf16 %v156_v10, %v155_v9  ;;  %v508_v12 = vld [vmem:[%s777_s1] sm:$0xff]   ;;  %480 = vmatprep.subr.bf16.mxu1 %v157_v7  ;;  %473 = vmatpush3.bf16.msra.mxu0 %v59_v3  ;;  %v237_v16 = vpack.c.bf16 %v234_v14, %v233_v13  ;;  %v313_v18 = vld [vmem:[#allocation2 + $0x60] sm:$0xff]  ;;  %v314_v19 = vld [vmem:[#allocation2 + $0x68] sm:$0xff]  ;;  %36 = vst.msk [vmem:[%s778_s2 + $0x8] sm:$0xff] %vm34_vm1, %v537_v46 }
  0x17   :  { %481 = vmatpush3.bf16.msra.mxu1 %v157_v7  ;;  %474 = vmatprep.subr.bf16.mxu0 %v60_v8  ;;  %v236_v17 = vld [vmem:[#allocation2 + $0x58] sm:$0xff]  ;;  %v509_v20 = vld [vmem:[%s777_s1 + $0x8] sm:$0xff]   ;;  %v317_v21 = vpack.c.bf16 %v314_v19, %v313_v18  ;;  %v315_v22 = vld [vmem:[#allocation2 + $0x70] sm:$0xff]  ;;  %38 = vst.msk [vmem:[%s778_s2 + $0x18] sm:$0xff] %vm34_vm1, %v537_v46 }
  0x18   :  { %482 = vmatprep.subr.bf16.mxu1 %v158_v11  ;;  %476 = vmatprep.mubr.msk.bf16.mxu0 %vm71_vm0, %v508_v12  ;;  %v316_v23 = vld [vmem:[#allocation2 + $0x78] sm:$0xff]  ;;  %v238_v24 = vpack.c.bf16 %v236_v17, %v235_v15  ;;  %39 = vst.msk [vmem:[%s778_s2 + $0x20] sm:$0xff] %vm34_vm1, %v537_v46  ;;  %40 = vst.msk [vmem:[%s778_s2 + $0x28] sm:$0xff] %vm34_vm1, %v537_v46 }
  0x19   :  { %484 = vmatprep.mubr.msk.bf16.mxu1 %vm71_vm0, %v508_v12  ;;  %v318_v25 = vpack.c.bf16 %v316_v23, %v315_v22  ;;  %41 = vst.msk [vmem:[%s778_s2 + $0x30] sm:$0xff] %vm34_vm1, %v537_v46  ;;  %42 = vst.msk [vmem:[%s778_s2 + $0x38] sm:$0xff] %vm34_vm1, %v537_v46 }
  0x1a   :  { %475 = vmatpush3.bf16.msra.mxu0 %v60_v8  ;;  %43 = vst.msk [vmem:[%s778_s2 + $0x40] sm:$0xff] %vm34_vm1, %v537_v46  ;;  %44 = vst.msk [vmem:[%s778_s2 + $0x48] sm:$0xff] %vm34_vm1, %v537_v46 }
  0x1b   :  { %483 = vmatpush3.bf16.msra.mxu1 %v158_v11  ;;  %488 = vmatprep.subr.bf16.mxu0 %v237_v16  ;;  %45 = vst.msk [vmem:[%s778_s2 + $0x50] sm:$0xff] %vm34_vm1, %v537_v46  ;;  %46 = vst.msk [vmem:[%s778_s2 + $0x58] sm:$0xff] %vm34_vm1, %v537_v46  ;;  %v394_v1 = vld [vmem:[%s778_s2 + $0x10] sm:$0xff] }
  0x1c   :  { %496 = vmatprep.subr.bf16.mxu1 %v317_v21  ;;  %47 = vst.msk [vmem:[%s778_s2 + $0x60] sm:$0xff] %vm34_vm1, %v537_v46  ;;  %48 = vst.msk [vmem:[%s778_s2 + $0x68] sm:$0xff] %vm34_vm1, %v537_v46 }
  0x1d   :  { %477 = vmatmul.mubr.msk.bf16.vlgmr.msra.gmra.mrb[0].mxu0 %vm71_vm0, %v509_v20  ;;  %49 = vst.msk [vmem:[%s778_s2 + $0x70] sm:$0xff] %vm34_vm1, %v537_v46  ;;  %50 = vst.msk [vmem:[%s778_s2 + $0x78] sm:$0xff] %vm34_vm1, %v537_v46  ;;  %v393_v19 = vld [vmem:[%s778_s2 + $0x8] sm:$0xff] }
  0x1e   :  { %485 = vmatmul.mubr.msk.bf16.vlgmr.msra.gmra.mrb[0].mxu1 %vm71_vm0, %v509_v20  ;;  %489 = vmatpush3.bf16.msra.mxu0 %v237_v16  ;;  %v395_v6 = vld [vmem:[%s778_s2 + $0x18] sm:$0xff] }
  0x1f   :  { %490 = vmatprep.subr.bf16.mxu0 %v238_v24  ;;  %497 = vmatpush3.bf16.msra.mxu1 %v317_v21 }
  0x20   :  { %492 = vmatprep.mubr.msk.bf16.mxu0 %vm71_vm0, %v508_v12  ;;  %498 = vmatprep.subr.bf16.mxu1 %v318_v25  ;;  %v398_v7 = vld [vmem:[%s778_s2 + $0x30] sm:$0xff]  ;;  %v399_v14 = vld [vmem:[%s778_s2 + $0x38] sm:$0xff] }
  0x21   :  { %500 = vmatprep.mubr.msk.bf16.mxu1 %vm71_vm0, %v508_v12 }
  0x22   :  { %491 = vmatpush3.bf16.msra.mxu0 %v238_v24 }
  0x23   :  { %499 = vmatpush3.bf16.msra.mxu1 %v318_v25 }
  0x25   :  { %493 = vmatmul.mubr.msk.bf16.vlgmr.msra.gmra.mrb[4].mxu0 %vm71_vm0, %v509_v20 }
  0x26   :  { %501 = vmatmul.mubr.msk.bf16.vlgmr.msra.gmra.mrb[4].mxu1 %vm71_vm0, %v509_v20  ;;  %v392_v20 = vld [vmem:[%s778_s2] sm:$0xff] }
  0xf0   :  { %v478_v26 = vpop.f32.mrb[0].mxu0 }
  0xf1   :  { %v486_v27 = vpop.f32.mrb[0].mxu1  ;;  %131 = vadd.xlane.f32.xlu1 %v478_v26  ;;  %v112_v28 = vpop.f32.mrb[1].mxu0  ;;  %v137_v41 = vmul.f32 %v478_v26, %v478_v26 }
  0xf2   :  { %212 = vadd.xlane.f32.xlu0 %v486_v27  ;;  %v193_v29 = vpop.f32.mrb[1].mxu1  ;;  %v479_v30 = vpop.f32.mrb[2].mxu0  ;;  %v218_v44 = vmul.f32 %v486_v27, %v486_v27  ;;  %v135_v48 = vmul.f32 %v112_v28, %v112_v28  ;;  %v397_v27 = vld [vmem:[%s778_s2 + $0x28] sm:$0xff] }
  0xf3   :  { %v487_v31 = vpop.f32.mrb[2].mxu1  ;;  %v115_v32 = vpop.f32.mrb[3].mxu0  ;;  %v138_v43 = vmul.f32 %v479_v30, %v479_v30  ;;  %v216_v50 = vmul.f32 %v193_v29, %v193_v29 }
  0xf4   :  { %v196_v33 = vpop.f32.mrb[3].mxu1  ;;  %v219_v45 = vmul.f32 %v487_v31, %v487_v31  ;;  %v136_v47 = vmul.f32 %v115_v32, %v115_v32 }
  0xf5   :  { %133 = vadd.xlane.f32.xlu1 %v479_v30  ;;  %v217_v49 = vmul.f32 %v196_v33, %v196_v33 }
  0xf6   :  { %127 = vadd.xlane.f32.xlu0 %v112_v28  ;;  %v396_v28 = vld [vmem:[%s778_s2 + $0x20] sm:$0xff] }
  0xf8   :  { %v494_v34 = vpop.f32.mrb[4].mxu0 }
  0xf9   :  { %214 = vadd.xlane.f32.xlu1 %v487_v31  ;;  %v273_v35 = vpop.f32.mrb[5].mxu0  ;;  %v579_v36 = vpop.f32.mrb[4].mxu1  ;;  %v298_v52 = vmul.f32 %v494_v34, %v494_v34 }
  0xfa   :  { %208 = vadd.xlane.f32.xlu0 %v193_v29  ;;  %v495_v37 = vpop.f32.mrb[6].mxu0  ;;  %v353_v38 = vpop.f32.mrb[5].mxu1  ;;  %v296_v54 = vmul.f32 %v273_v35, %v273_v35  ;;  %v378_v58 = vmul.f32 %v579_v36, %v579_v36 }
  0xfb   :  { %v276_v39 = vpop.f32.mrb[7].mxu0  ;;  %v503_v40 = vpop.f32.mrb[6].mxu1  ;;  %v299_v51 = vmul.f32 %v495_v37, %v495_v37  ;;  %v376_v56 = vmul.f32 %v353_v38, %v353_v38 }
  0xfc   :  { %v356_v42 = vpop.f32.mrb[7].mxu1  ;;  %v297_v53 = vmul.f32 %v276_v39, %v276_v39  ;;  %v379_v57 = vmul.f32 %v503_v40, %v503_v40 }
  0xfd   :  { %210 = vadd.xlane.f32.xlu1 %v196_v33  ;;  %v377_v55 = vmul.f32 %v356_v42, %v356_v42 }
  0xfe   :  { %143 = vadd.xlane.f32.xlu0 %v137_v41 }
 0x101   :  { %145 = vadd.xlane.f32.xlu1 %v138_v43  ;;  %v403_v43 = vld [vmem:[%s778_s2 + $0x58] sm:$0xff] }
 0x102   :  { %224 = vadd.xlane.f32.xlu0 %v218_v44  ;;  %v402_v44 = vld [vmem:[%s778_s2 + $0x50] sm:$0xff] }
 0x105   :  { %226 = vadd.xlane.f32.xlu1 %v219_v45 }
 0x106   :  { %129 = vadd.xlane.f32.xlu0 %v115_v32 }
 0x109   :  { %141 = vadd.xlane.f32.xlu1 %v136_v47 }
 0x10a   :  { %139 = vadd.xlane.f32.xlu0 %v135_v48 }
 0x10d   :  { %222 = vadd.xlane.f32.xlu1 %v217_v49 }
 0x10e   :  { %220 = vadd.xlane.f32.xlu0 %v216_v50 }
 0x111   :  { %294 = vadd.xlane.f32.xlu1 %v495_v37 }
 0x112   :  { %292 = vadd.xlane.f32.xlu0 %v494_v34 }
 0x115   :  { %374 = vadd.xlane.f32.xlu1 %v503_v40 }
 0x116   :  { %372 = vadd.xlane.f32.xlu0 %v579_v36 }
 0x119   :  { %290 = vadd.xlane.f32.xlu1 %v276_v39 }
 0x11a   :  { %288 = vadd.xlane.f32.xlu0 %v273_v35 }
 0x11d   :  { %370 = vadd.xlane.f32.xlu1 %v356_v42 }
 0x11e   :  { %368 = vadd.xlane.f32.xlu0 %v353_v38 }
 0x121   :  { %306 = vadd.xlane.f32.xlu1 %v299_v51  ;;  %v401_v51 = vld [vmem:[%s778_s2 + $0x48] sm:$0xff] }
 0x122   :  { %304 = vadd.xlane.f32.xlu0 %v298_v52  ;;  %v400_v52 = vld [vmem:[%s778_s2 + $0x40] sm:$0xff] }
 0x125   :  { %302 = vadd.xlane.f32.xlu1 %v297_v53 }
 0x126   :  { %300 = vadd.xlane.f32.xlu0 %v296_v54 }
 0x129   :  { %382 = vadd.xlane.f32.xlu1 %v377_v55 }
 0x12a   :  { %380 = vadd.xlane.f32.xlu0 %v376_v56 }
 0x12d   :  { %386 = vadd.xlane.f32.xlu1 %v379_v57 }
 0x12e   :  { %384 = vadd.xlane.f32.xlu0 %v378_v58 }
 0x17e   :  { %v132_v59 = vpop.xlane.xlu1 %131 }
 0x17f   :  { %v213_v60 = vpop.xlane.xlu0 %212 }
 0x182   :  { %v134_v61 = vpop.xlane.xlu1 %133 }
 0x183   :  { %v128_v62 = vpop.xlane.xlu0 %127 }
 0x186   :  { %v215_v63 = vpop.xlane.xlu1 %214 }
 0x187   :  { %v209_v0 = vpop.xlane.xlu0 %208 }
 0x18a   :  { %v211_v2 = vpop.xlane.xlu1 %210 }
 0x18b   :  { %v144_v3 = vpop.xlane.xlu0 %143 }
 0x18c   :  { %v150_v4 = vsel %vm147_vm2, %v132_v59, %v144_v3  ;;  %v405_v59 = vld [vmem:[%s778_s2 + $0x68] sm:$0xff]  ;;  %v407_v3 = vld [vmem:[%s778_s2 + $0x78] sm:$0xff] }
 0x18d   :  { %v410_v5 = vadd.f32 %v394_v1, %v150_v4  ;;  %v406_v4 = vld [vmem:[%s778_s2 + $0x70] sm:$0xff] }
 0x18e   :  { %v146_v8 = vpop.xlane.xlu1 %145 }
 0x18f   :  { %427 = vst.msk [vmem:[%s778_s2 + $0x10] sm:$0xff] %vm34_vm1, %v410_v5  ;;  %v225_v9 = vpop.xlane.xlu0 %224  ;;  %v151_v10 = vsel %vm147_vm2, %v134_v61, %v146_v8 }
 0x190   :  { %v230_v11 = vsel %vm147_vm2, %v213_v60, %v225_v9  ;;  %v411_v12 = vadd.f32 %v395_v6, %v151_v10  ;;  %v404_v60 = vld [vmem:[%s778_s2 + $0x60] sm:$0xff] }
 0x191   :  { %v414_v13 = vadd.f32 %v398_v7, %v230_v11 }
 0x192   :  { %428 = vst.msk [vmem:[%s778_s2 + $0x18] sm:$0xff] %vm34_vm1, %v411_v12  ;;  %v227_v15 = vpop.xlane.xlu1 %226 }
 0x193   :  { %431 = vst.msk [vmem:[%s778_s2 + $0x30] sm:$0xff] %vm34_vm1, %v414_v13  ;;  %v231_v16 = vsel %vm147_vm2, %v215_v63, %v227_v15  ;;  %v130_v17 = vpop.xlane.xlu0 %129 }
 0x194   :  { %v415_v18 = vadd.f32 %v399_v14, %v231_v16 }
 0x196   :  { %432 = vst.msk [vmem:[%s778_s2 + $0x38] sm:$0xff] %vm34_vm1, %v415_v18  ;;  %v142_v21 = vpop.xlane.xlu1 %141 }
 0x197   :  { %v140_v22 = vpop.xlane.xlu0 %139  ;;  %v149_v23 = vsel %vm147_vm2, %v130_v17, %v142_v21 }
 0x198   :  { %v148_v24 = vsel %vm147_vm2, %v128_v62, %v140_v22  ;;  %v409_v25 = vadd.f32 %v393_v19, %v149_v23 }
 0x199   :  { %v408_v26 = vadd.f32 %v392_v20, %v148_v24 }
 0x19a   :  { %426 = vst.msk [vmem:[%s778_s2 + $0x8] sm:$0xff] %vm34_vm1, %v409_v25  ;;  %v223_v29 = vpop.xlane.xlu1 %222 }
 0x19b   :  { %425 = vst.msk [vmem:[%s778_s2] sm:$0xff] %vm34_vm1, %v408_v26  ;;  %v221_v30 = vpop.xlane.xlu0 %220  ;;  %v229_v31 = vsel %vm147_vm2, %v211_v2, %v223_v29 }
 0x19c   :  { %v228_v32 = vsel %vm147_vm2, %v209_v0, %v221_v30  ;;  %v413_v33 = vadd.f32 %v397_v27, %v229_v31 }
 0x19d   :  { %v412_v34 = vadd.f32 %v396_v28, %v228_v32 }
 0x19e   :  { %430 = vst.msk [vmem:[%s778_s2 + $0x28] sm:$0xff] %vm34_vm1, %v413_v33  ;;  %v295_v35 = vpop.xlane.xlu1 %294 }
 0x19f   :  { %429 = vst.msk [vmem:[%s778_s2 + $0x20] sm:$0xff] %vm34_vm1, %v412_v34  ;;  %v293_v36 = vpop.xlane.xlu0 %292 }
 0x1a2   :  { %v375_v37 = vpop.xlane.xlu1 %374 }
 0x1a3   :  { %v373_v38 = vpop.xlane.xlu0 %372 }
 0x1a6   :  { %v291_v39 = vpop.xlane.xlu1 %290 }
 0x1a7   :  { %v289_v40 = vpop.xlane.xlu0 %288 }
 0x1aa   :  { %v371_v41 = vpop.xlane.xlu1 %370 }
 0x1ab   :  { %v369_v42 = vpop.xlane.xlu0 %368 }
 0x1ae   :  { %v307_v45 = vpop.xlane.xlu1 %306 }
 0x1af   :  { %v305_v46 = vpop.xlane.xlu0 %304  ;;  %v311_v47 = vsel %vm147_vm2, %v295_v35, %v307_v45 }
 0x1b0   :  { %v310_v48 = vsel %vm147_vm2, %v293_v36, %v305_v46  ;;  %v419_v49 = vadd.f32 %v403_v43, %v311_v47 }
 0x1b1   :  { %v418_v50 = vadd.f32 %v402_v44, %v310_v48 }
 0x1b2   :  { %436 = vst.msk [vmem:[%s778_s2 + $0x58] sm:$0xff] %vm34_vm1, %v419_v49  ;;  %v303_v53 = vpop.xlane.xlu1 %302 }
 0x1b3   :  { %435 = vst.msk [vmem:[%s778_s2 + $0x50] sm:$0xff] %vm34_vm1, %v418_v50  ;;  %v301_v54 = vpop.xlane.xlu0 %300  ;;  %v309_v55 = vsel %vm147_vm2, %v291_v39, %v303_v53 }
 0x1b4   :  { %v308_v56 = vsel %vm147_vm2, %v289_v40, %v301_v54  ;;  %v417_v57 = vadd.f32 %v401_v51, %v309_v55 }
 0x1b5   :  { %v416_v58 = vadd.f32 %v400_v52, %v308_v56 }
 0x1b6   :  { %434 = vst.msk [vmem:[%s778_s2 + $0x48] sm:$0xff] %vm34_vm1, %v417_v57  ;;  %v383_v61 = vpop.xlane.xlu1 %382 }
 0x1b7   :  { %433 = vst.msk [vmem:[%s778_s2 + $0x40] sm:$0xff] %vm34_vm1, %v416_v58  ;;  %v381_v62 = vpop.xlane.xlu0 %380  ;;  %v389_v63 = vsel %vm147_vm2, %v371_v41, %v383_v61 }
 0x1b8   :  { %v388_v0 = vsel %vm147_vm2, %v369_v42, %v381_v62  ;;  %v421_v1 = vadd.f32 %v405_v59, %v389_v63 }
 0x1b9   :  { %v420_v2 = vadd.f32 %v404_v60, %v388_v0 }
 0x1ba   :  { %438 = vst.msk [vmem:[%s778_s2 + $0x68] sm:$0xff] %vm34_vm1, %v421_v1  ;;  %v387_v5 = vpop.xlane.xlu1 %386 }
 0x1bb   :  { %437 = vst.msk [vmem:[%s778_s2 + $0x60] sm:$0xff] %vm34_vm1, %v420_v2  ;;  %v385_v6 = vpop.xlane.xlu0 %384  ;;  %v391_v7 = vsel %vm147_vm2, %v375_v37, %v387_v5 }
 0x1bc   :  { %v390_v8 = vsel %vm147_vm2, %v373_v38, %v385_v6  ;;  %v423_v9 = vadd.f32 %v407_v3, %v391_v7 }
 0x1bd   :  { %v422_v10 = vadd.f32 %v406_v4, %v390_v8 }
 0x1be   :  { %440 = vst.msk [vmem:[%s778_s2 + $0x78] sm:$0xff] %vm34_vm1, %v423_v9 }
 0x1bf   :  { %439 = vst.msk [vmem:[%s778_s2 + $0x70] sm:$0xff] %vm34_vm1, %v422_v10 }
 0x1c0   :  { %445 = vsyncpa [#allocation3], 1 }

// kernel: se_basic_block.4
= control target key start
LH: loop header
LB: loop body
LE: loop exit
PB: predicated region body
PF: predicated region fallthrough
CT: control target
= control target key end

     0   :  { %v915_v3 = vmov 0   ;;  %vm91_vm0 = vcmask 261120   ;;  %vm42_vm1 = vcmask 15360   ;;  %vm286_vm2 = vcmask 7168   ;;  %s1293_s0 = inlined_call_operand.vmem [shape: f32[4,32,128], index: 0, kind: input, shape index: {}]   ;;  %s1294_s1 = inlined_call_operand.vmem [shape: bf16[32,32], index: 1, kind: input, shape index: {}]   ;;  %s1295_s4 = inlined_call_operand.vmem [shape: f32[32,1], index: 4, kind: input, shape index: {}]   ;;  %s1296_s3 = inlined_call_operand.vmem [shape: f32[32,1], index: 3, kind: input, shape index: {}]   ;;  %s1297_s2 = inlined_call_operand.vmem [shape: bf16[32,32], index: 2, kind: input, shape index: {}]   ;;  %s1298_s5 = inlined_call_operand.vmem [shape: f32[4,1,32,2], index: 5, kind: output, shape index: {}]  }
   0x1   :  { %v75_v0 = vld [vmem:[%s1293_s0] sm:$0xff]  ;;  %v76_v1 = vld [vmem:[%s1293_s0 + $0x8] sm:$0xff]  ;;  %v77_v2 = vld [vmem:[%s1293_s0 + $0x10] sm:$0xff]  ;;  %910 = vset.pattern.permute.xlu1 %v915_v3  ;;  %909 = vset.pattern.permute.xlu0 %v915_v3 }
   0x2   :  { %v79_v4 = vpack.c.bf16 %v76_v1, %v75_v0  ;;  %v78_v5 = vld [vmem:[%s1293_s0 + $0x18] sm:$0xff]  ;;  %v911_v7 = vld [vmem:[%s1294_s1] sm:$0xff]   ;;  %v788_v9 = vld [vmem:[%s1293_s0 + $0x28] sm:$0xff] }
   0x3   :  { %v80_v6 = vpack.c.bf16 %v78_v5, %v77_v2  ;;  %v787_v8 = vld [vmem:[%s1293_s0 + $0x20] sm:$0xff]  ;;  %847 = vmatprep.mubr.msk.bf16.mxu0 %vm91_vm0, %v911_v7  ;;  %v789_v11 = vld [vmem:[%s1293_s0 + $0x30] sm:$0xff]  ;;  %v790_v12 = vld [vmem:[%s1293_s0 + $0x38] sm:$0xff] }
   0x4   :  { %843 = vmatprep.subr.bf16.mxu0 %v79_v4  ;;  %v296_v10 = vpack.c.bf16 %v788_v9, %v787_v8  ;;  %v912_v13 = vld [vmem:[%s1294_s1 + $0x8] sm:$0xff]   ;;  %v71_v14 = vld [vmem:[%s1295_s4] sm:$0xff]  ;;  %v297_v16 = vpack.c.bf16 %v790_v12, %v789_v11  ;;  %v797_v22 = vld [vmem:[%s1293_s0 + $0x50] sm:$0xff] }
   0x5   :  { %844 = vmatpush3.bf16.msra.mxu0 %v79_v4  ;;  %v67_v15 = vld [vmem:[%s1296_s3] sm:$0xff]  ;;  %173 = vperm.xlu1 %910, %v71_v14   ;;  %v796_v18 = vld [vmem:[%s1293_s0 + $0x48] sm:$0xff]  ;;  %v798_v23 = vld [vmem:[%s1293_s0 + $0x58] sm:$0xff] }
   0x6   :  { %845 = vmatprep.subr.bf16.mxu0 %v80_v6  ;;  %149 = vperm.xlu0 %909, %v67_v15   ;;  %v795_v17 = vld [vmem:[%s1293_s0 + $0x40] sm:$0xff]  ;;  %v72_v19 = vld [vmem:[%s1295_s4 + $0x8] sm:$0xff]  ;;  %v70_v24 = vld [vmem:[%s1296_s3 + $0x18] sm:$0xff]  ;;  %v440_v26 = vpack.c.bf16 %v798_v23, %v797_v22 }
   0x7   :  { %v68_v20 = vld [vmem:[%s1296_s3 + $0x8] sm:$0xff]  ;;  %v439_v21 = vpack.c.bf16 %v796_v18, %v795_v17  ;;  %v69_v25 = vld [vmem:[%s1296_s3 + $0x10] sm:$0xff]  ;;  %v803_v27 = vld [vmem:[%s1293_s0 + $0x60] sm:$0xff] }
   0x8   :  { %v804_v28 = vld [vmem:[%s1293_s0 + $0x68] sm:$0xff]  ;;  %v74_v29 = vld [vmem:[%s1295_s4 + $0x18] sm:$0xff]  ;;  %v73_v30 = vld [vmem:[%s1295_s4 + $0x10] sm:$0xff] }
   0x9   :  { %846 = vmatpush3.bf16.msra.mxu0 %v80_v6  ;;  %178 = vperm.xlu1 %910, %v72_v19   ;;  %v582_v31 = vpack.c.bf16 %v804_v28, %v803_v27  ;;  %v805_v32 = vld [vmem:[%s1293_s0 + $0x70] sm:$0xff]  ;;  %v806_v33 = vld [vmem:[%s1293_s0 + $0x78] sm:$0xff]  ;;  %v1036_v35 = vld [vmem:[%s1297_s2] sm:$0xff]  }
   0xa   :  { %859 = vmatprep.subr.bf16.mxu0 %v296_v10  ;;  %154 = vperm.xlu0 %909, %v68_v20   ;;  %v583_v34 = vpack.c.bf16 %v806_v33, %v805_v32  ;;  %v914_v15 = vld [vmem:[%s1297_s2 + $0x8] sm:$0xff]  }
   0xb   :  { %855 = vmatprep.mubr.msk.bf16.mxu1 %vm91_vm0, %v1036_v35 }
   0xc   :  { %848 = vmatmul.mubr.msk.bf16.vlgmr.msra.gmra.mrb[0].mxu0 %vm91_vm0, %v912_v13 }
   0xd   :  { %860 = vmatpush3.bf16.msra.mxu0 %v296_v10  ;;  %863 = vmatprep.mubr.msk.bf16.mxu0 %vm91_vm0, %v911_v7 }
   0xe   :  { %861 = vmatprep.subr.bf16.mxu0 %v297_v16  ;;  %164 = vperm.xlu1 %910, %v70_v24  }
   0xf   :  { %159 = vperm.xlu0 %909, %v69_v25  }
  0x11   :  { %862 = vmatpush3.bf16.msra.mxu0 %v297_v16 }
  0x12   :  { %875 = vmatprep.subr.bf16.mxu0 %v439_v21  ;;  %188 = vperm.xlu1 %910, %v74_v29  }
  0x13   :  { %183 = vperm.xlu0 %909, %v73_v30  }
  0x14   :  { %864 = vmatmul.mubr.msk.bf16.vlgmr.msra.gmra.mrb[4].mxu0 %vm91_vm0, %v912_v13 }
  0x15   :  { %876 = vmatpush3.bf16.msra.mxu0 %v439_v21  ;;  %879 = vmatprep.mubr.msk.bf16.mxu0 %vm91_vm0, %v911_v7 }
  0x16   :  { %877 = vmatprep.subr.bf16.mxu0 %v440_v26 }
  0x19   :  { %878 = vmatpush3.bf16.msra.mxu0 %v440_v26 }
  0x1a   :  { %891 = vmatprep.subr.bf16.mxu0 %v582_v31 }
  0x1c   :  { %880 = vmatmul.mubr.msk.bf16.vlgmr.msra.gmra.mrb[8].mxu0 %vm91_vm0, %v912_v13 }
  0x1d   :  { %892 = vmatpush3.bf16.msra.mxu0 %v582_v31  ;;  %895 = vmatprep.mubr.msk.bf16.mxu0 %vm91_vm0, %v911_v7 }
  0x1e   :  { %893 = vmatprep.subr.bf16.mxu0 %v583_v34 }
  0x21   :  { %894 = vmatpush3.bf16.msra.mxu0 %v583_v34 }
  0x24   :  { %896 = vmatmul.mubr.msk.bf16.vlgmr.msra.gmra.mrb[12].mxu0 %vm91_vm0, %v912_v13 }
  0x84   :  { %v1042_v37 = vpop.permute.xlu1 %173 }
  0x85   :  { %v1040_v36 = vpop.permute.xlu0 %149 }
  0x88   :  { %v1046_v39 = vpop.permute.xlu1 %178 }
  0x89   :  { %v1044_v38 = vpop.permute.xlu0 %154 }
  0x8d   :  { %v1050_v41 = vpop.permute.xlu1 %164 }
  0x8e   :  { %v1048_v40 = vpop.permute.xlu0 %159 }
  0x91   :  { %v1058_v51 = vpop.permute.xlu1 %188 }
  0x92   :  { %v1053_v45 = vpop.permute.xlu0 %183 }
  0xdf   :  { %v849_v42 = vpop.f32.mrb[0].mxu0 }
  0xe0   :  { %v169_v43 = vmul.f32 %v849_v42, %v1048_v40  ;;  %v132_v44 = vpop.f32.mrb[1].mxu0 }
  0xe1   :  { %v167_v46 = vmul.f32 %v1040_v36, %v132_v44  ;;  %v850_v47 = vpop.f32.mrb[2].mxu0 }
  0xe2   :  { %v193_v48 = vadd.f32 %v1053_v45, %v169_v43  ;;  %v170_v49 = vmul.f32 %v850_v47, %v1050_v41  ;;  %v135_v50 = vpop.f32.mrb[3].mxu0 }
  0xe3   :  { %v191_v52 = vadd.f32 %v1042_v37, %v167_v46  ;;  %v168_v53 = vmul.f32 %v1044_v38, %v135_v50 }
  0xe4   :  { %v194_v54 = vadd.f32 %v1058_v51, %v170_v49  ;;  %v197_v56 = vmax.f32 %v193_v48, 0.0 }
  0xe5   :  { %v192_v55 = vadd.f32 %v1046_v39, %v168_v53  ;;  %v195_v58 = vmax.f32 %v191_v52, 0.0 }
  0xe6   :  { %v198_v57 = vmax.f32 %v194_v54, 0.0 }
  0xe7   :  { %v196_v59 = vmax.f32 %v192_v55, 0.0  ;;  %v865_v60 = vpop.f32.mrb[4].mxu0 }
  0xe8   :  { %v349_v61 = vmul.f32 %v865_v60, %v1048_v40  ;;  %v332_v62 = vpop.f32.mrb[5].mxu0  ;;  %v200_v63 = vpack.c.bf16 %v198_v57, %v197_v56 }
  0xe9   :  { %v347_v0 = vmul.f32 %v332_v62, %v1040_v36  ;;  %v866_v1 = vpop.f32.mrb[6].mxu0  ;;  %v199_v2 = vpack.c.bf16 %v196_v59, %v195_v58 }
  0xea   :  { %v353_v3 = vadd.f32 %v349_v61, %v1053_v45  ;;  %v350_v4 = vmul.f32 %v866_v1, %v1050_v41  ;;  %v335_v5 = vpop.f32.mrb[7].mxu0 }
  0xeb   :  { %v351_v6 = vadd.f32 %v347_v0, %v1042_v37  ;;  %v348_v7 = vmul.f32 %v335_v5, %v1044_v38  ;;  %851 = vmatprep.subr.bf16.mxu1 %v199_v2 }
  0xec   :  { %v354_v8 = vadd.f32 %v350_v4, %v1058_v51  ;;  %852 = vmatpush3.bf16.msra.mxu1 %v199_v2  ;;  %v357_v10 = vmax.f32 %v353_v3, 0.0 }
  0xed   :  { %v352_v9 = vadd.f32 %v348_v7, %v1046_v39  ;;  %853 = vmatprep.subr.bf16.mxu1 %v200_v63  ;;  %v355_v12 = vmax.f32 %v351_v6, 0.0 }
  0xee   :  { %v358_v11 = vmax.f32 %v354_v8, 0.0 }
  0xef   :  { %v356_v13 = vmax.f32 %v352_v9, 0.0  ;;  %v881_v14 = vpop.f32.mrb[8].mxu0 }
  0xf0   :  { %v492_v16 = vmul.f32 %v881_v14, %v1048_v40  ;;  %854 = vmatpush3.bf16.msra.mxu1 %v200_v63  ;;  %v475_v17 = vpop.f32.mrb[9].mxu0  ;;  %v360_v18 = vpack.c.bf16 %v358_v11, %v357_v10 }
  0xf1   :  { %v490_v19 = vmul.f32 %v475_v17, %v1040_v36  ;;  %v882_v20 = vpop.f32.mrb[10].mxu0  ;;  %v359_v21 = vpack.c.bf16 %v356_v13, %v355_v12 }
  0xf2   :  { %v496_v22 = vadd.f32 %v492_v16, %v1053_v45  ;;  %v493_v23 = vmul.f32 %v882_v20, %v1050_v41  ;;  %v478_v24 = vpop.f32.mrb[11].mxu0 }
  0xf3   :  { %v494_v25 = vadd.f32 %v490_v19, %v1042_v37  ;;  %v491_v26 = vmul.f32 %v478_v24, %v1044_v38  ;;  %856 = vmatmul.mubr.msk.bf16.vlgmr.msra.gmra.mrb[0].mxu1 %vm91_vm0, %v914_v15  ;;  %867 = vmatprep.subr.bf16.mxu1 %v359_v21 }
  0xf4   :  { %v497_v27 = vadd.f32 %v493_v23, %v1058_v51  ;;  %868 = vmatpush3.bf16.msra.mxu1 %v359_v21  ;;  %871 = vmatprep.mubr.msk.bf16.mxu1 %vm91_vm0, %v1036_v35  ;;  %v500_v29 = vmax.f32 %v496_v22, 0.0 }
  0xf5   :  { %v495_v28 = vadd.f32 %v491_v26, %v1046_v39  ;;  %869 = vmatprep.subr.bf16.mxu1 %v360_v18  ;;  %v498_v31 = vmax.f32 %v494_v25, 0.0 }
  0xf6   :  { %v501_v30 = vmax.f32 %v497_v27, 0.0 }
  0xf7   :  { %v499_v32 = vmax.f32 %v495_v28, 0.0  ;;  %v897_v33 = vpop.f32.mrb[12].mxu0 }
  0xf8   :  { %v635_v34 = vmul.f32 %v897_v33, %v1048_v40  ;;  %870 = vmatpush3.bf16.msra.mxu1 %v360_v18  ;;  %v618_v42 = vpop.f32.mrb[13].mxu0  ;;  %v503_v43 = vpack.c.bf16 %v501_v30, %v500_v29 }
  0xf9   :  { %v633_v44 = vmul.f32 %v618_v42, %v1040_v36  ;;  %v898_v46 = vpop.f32.mrb[14].mxu0  ;;  %v502_v47 = vpack.c.bf16 %v499_v32, %v498_v31 }
  0xfa   :  { %v639_v48 = vadd.f32 %v635_v34, %v1053_v45  ;;  %v636_v49 = vmul.f32 %v898_v46, %v1050_v41  ;;  %v621_v50 = vpop.f32.mrb[15].mxu0 }
  0xfb   :  { %v637_v52 = vadd.f32 %v633_v44, %v1042_v37  ;;  %v634_v53 = vmul.f32 %v621_v50, %v1044_v38  ;;  %883 = vmatprep.subr.bf16.mxu1 %v502_v47  ;;  %872 = vmatmul.mubr.msk.bf16.vlgmr.msra.gmra.mrb[4].mxu1 %vm91_vm0, %v914_v15 }
  0xfc   :  { %v640_v40 = vadd.f32 %v636_v49, %v1058_v51  ;;  %884 = vmatpush3.bf16.msra.mxu1 %v502_v47  ;;  %887 = vmatprep.mubr.msk.bf16.mxu1 %vm91_vm0, %v1036_v35  ;;  %v643_v45 = vmax.f32 %v639_v48, 0.0 }
  0xfd   :  { %v638_v36 = vadd.f32 %v634_v53, %v1046_v39  ;;  %885 = vmatprep.subr.bf16.mxu1 %v503_v43  ;;  %v641_v41 = vmax.f32 %v637_v52, 0.0 }
  0xfe   :  { %v644_v54 = vmax.f32 %v640_v40, 0.0 }
  0xff   :  { %v642_v55 = vmax.f32 %v638_v36, 0.0 }
 0x100   :  { %886 = vmatpush3.bf16.msra.mxu1 %v503_v43  ;;  %v646_v37 = vpack.c.bf16 %v644_v54, %v643_v45 }
 0x101   :  { %v645_v56 = vpack.c.bf16 %v642_v55, %v641_v41 }
 0x103   :  { %899 = vmatprep.subr.bf16.mxu1 %v645_v56  ;;  %888 = vmatmul.mubr.msk.bf16.vlgmr.msra.gmra.mrb[8].mxu1 %vm91_vm0, %v914_v15 }
 0x104   :  { %900 = vmatpush3.bf16.msra.mxu1 %v645_v56  ;;  %903 = vmatprep.mubr.msk.bf16.mxu1 %vm91_vm0, %v1036_v35  ;;  %v916_v35 = vmov 0.0  }
 0x105   :  { %901 = vmatprep.subr.bf16.mxu1 %v646_v37  ;;  %45 = vst.msk [vmem:[%s1298_s5 + $0x10] sm:$0xff] %vm42_vm1, %v916_v35  ;;  %43 = vst.msk [vmem:[%s1298_s5] sm:$0xff] %vm42_vm1, %v916_v35 }
 0x106   :  { %44 = vst.msk [vmem:[%s1298_s5 + $0x8] sm:$0xff] %vm42_vm1, %v916_v35  ;;  %46 = vst.msk [vmem:[%s1298_s5 + $0x18] sm:$0xff] %vm42_vm1, %v916_v35 }
 0x107   :  { %47 = vst.msk [vmem:[%s1298_s5 + $0x20] sm:$0xff] %vm42_vm1, %v916_v35  ;;  %48 = vst.msk [vmem:[%s1298_s5 + $0x28] sm:$0xff] %vm42_vm1, %v916_v35 }
 0x108   :  { %902 = vmatpush3.bf16.msra.mxu1 %v646_v37  ;;  %49 = vst.msk [vmem:[%s1298_s5 + $0x30] sm:$0xff] %vm42_vm1, %v916_v35  ;;  %50 = vst.msk [vmem:[%s1298_s5 + $0x38] sm:$0xff] %vm42_vm1, %v916_v35 }
 0x109   :  { %51 = vst.msk [vmem:[%s1298_s5 + $0x40] sm:$0xff] %vm42_vm1, %v916_v35  ;;  %52 = vst.msk [vmem:[%s1298_s5 + $0x48] sm:$0xff] %vm42_vm1, %v916_v35 }
 0x10a   :  { %53 = vst.msk [vmem:[%s1298_s5 + $0x50] sm:$0xff] %vm42_vm1, %v916_v35  ;;  %54 = vst.msk [vmem:[%s1298_s5 + $0x58] sm:$0xff] %vm42_vm1, %v916_v35 }
 0x10b   :  { %904 = vmatmul.mubr.msk.bf16.vlgmr.msra.gmra.mrb[12].mxu1 %vm91_vm0, %v914_v15  ;;  %55 = vst.msk [vmem:[%s1298_s5 + $0x60] sm:$0xff] %vm42_vm1, %v916_v35  ;;  %56 = vst.msk [vmem:[%s1298_s5 + $0x68] sm:$0xff] %vm42_vm1, %v916_v35 }
 0x10c   :  { %57 = vst.msk [vmem:[%s1298_s5 + $0x70] sm:$0xff] %vm42_vm1, %v916_v35  ;;  %58 = vst.msk [vmem:[%s1298_s5 + $0x78] sm:$0xff] %vm42_vm1, %v916_v35  ;;  %v722_v23 = vld [vmem:[%s1298_s5 + $0x10] sm:$0xff]  ;;  %v720_v30 = vld [vmem:[%s1298_s5] sm:$0xff] }
 0x10d   :  { %v723_v33 = vld [vmem:[%s1298_s5 + $0x18] sm:$0xff]  ;;  %v721_v47 = vld [vmem:[%s1298_s5 + $0x8] sm:$0xff] }
 0x10e   :  { %v724_v55 = vld [vmem:[%s1298_s5 + $0x20] sm:$0xff] }
 0x10f   :  { %v726_v40 = vld [vmem:[%s1298_s5 + $0x30] sm:$0xff] }
 0x1c6   :  { %v857_v38 = vpop.f32.mrb[0].mxu1 }
 0x1c7   :  { %270 = vadd.xlane.f32.xlu0 %v857_v38  ;;  %v251_v39 = vpop.f32.mrb[1].mxu1  ;;  %v276_v51 = vmul.f32 %v857_v38, %v857_v38  ;;  %v727_v38 = vld [vmem:[%s1298_s5 + $0x38] sm:$0xff] }
 0x1c8   :  { %v858_v57 = vpop.f32.mrb[2].mxu1  ;;  %v274_v60 = vmul.f32 %v251_v39, %v251_v39 }
 0x1c9   :  { %282 = vadd.xlane.f32.xlu1 %v276_v51  ;;  %v254_v58 = vpop.f32.mrb[3].mxu1  ;;  %v277_v63 = vmul.f32 %v858_v57, %v858_v57 }
 0x1ca   :  { %v275_v1 = vmul.f32 %v254_v58, %v254_v58 }
 0x1cb   :  { %266 = vadd.xlane.f32.xlu0 %v251_v39 }
 0x1cd   :  { %268 = vadd.xlane.f32.xlu1 %v254_v58 }
 0x1ce   :  { %v873_v59 = vpop.f32.mrb[4].mxu1 }
 0x1cf   :  { %272 = vadd.xlane.f32.xlu0 %v858_v57  ;;  %v395_v61 = vpop.f32.mrb[5].mxu1  ;;  %v420_v6 = vmul.f32 %v873_v59, %v873_v59 }
 0x1d0   :  { %v874_v62 = vpop.f32.mrb[6].mxu1  ;;  %v418_v8 = vmul.f32 %v395_v61, %v395_v61 }
 0x1d1   :  { %278 = vadd.xlane.f32.xlu1 %v274_v60  ;;  %v398_v0 = vpop.f32.mrb[7].mxu1  ;;  %v421_v11 = vmul.f32 %v874_v62, %v874_v62  ;;  %v725_v60 = vld [vmem:[%s1298_s5 + $0x28] sm:$0xff] }
 0x1d2   :  { %v419_v13 = vmul.f32 %v398_v0, %v398_v0 }
 0x1d3   :  { %284 = vadd.xlane.f32.xlu0 %v277_v63 }
 0x1d5   :  { %414 = vadd.xlane.f32.xlu1 %v873_v59 }
 0x1d6   :  { %v889_v2 = vpop.f32.mrb[8].mxu1 }
 0x1d7   :  { %280 = vadd.xlane.f32.xlu0 %v275_v1  ;;  %v538_v3 = vpop.f32.mrb[9].mxu1  ;;  %v563_v14 = vmul.f32 %v889_v2, %v889_v2  ;;  %v730_v1 = vld [vmem:[%s1298_s5 + $0x50] sm:$0xff] }
 0x1d8   :  { %v890_v4 = vpop.f32.mrb[10].mxu1  ;;  %v561_v15 = vmul.f32 %v538_v3, %v538_v3 }
 0x1d9   :  { %410 = vadd.xlane.f32.xlu1 %v395_v61  ;;  %v541_v5 = vpop.f32.mrb[11].mxu1  ;;  %v564_v16 = vmul.f32 %v890_v4, %v890_v4 }
 0x1da   :  { %v562_v17 = vmul.f32 %v541_v5, %v541_v5 }
 0x1db   :  { %416 = vadd.xlane.f32.xlu0 %v874_v62 }
 0x1dd   :  { %426 = vadd.xlane.f32.xlu1 %v420_v6  ;;  %v728_v6 = vld [vmem:[%s1298_s5 + $0x40] sm:$0xff] }
 0x1de   :  { %v905_v7 = vpop.f32.mrb[12].mxu1 }
 0x1df   :  { %412 = vadd.xlane.f32.xlu0 %v398_v0  ;;  %v681_v9 = vpop.f32.mrb[13].mxu1  ;;  %v706_v19 = vmul.f32 %v905_v7, %v905_v7 }
 0x1e0   :  { %v906_v10 = vpop.f32.mrb[14].mxu1  ;;  %v704_v18 = vmul.f32 %v681_v9, %v681_v9 }
 0x1e1   :  { %422 = vadd.xlane.f32.xlu1 %v418_v8  ;;  %v684_v12 = vpop.f32.mrb[15].mxu1  ;;  %v707_v21 = vmul.f32 %v906_v10, %v906_v10 }
 0x1e2   :  { %v705_v20 = vmul.f32 %v684_v12, %v684_v12 }
 0x1e3   :  { %428 = vadd.xlane.f32.xlu0 %v421_v11 }
 0x1e5   :  { %557 = vadd.xlane.f32.xlu1 %v889_v2 }
 0x1e7   :  { %424 = vadd.xlane.f32.xlu0 %v419_v13 }
 0x1e9   :  { %553 = vadd.xlane.f32.xlu1 %v538_v3 }
 0x1eb   :  { %559 = vadd.xlane.f32.xlu0 %v890_v4 }
 0x1ed   :  { %569 = vadd.xlane.f32.xlu1 %v563_v14 }
 0x1ef   :  { %555 = vadd.xlane.f32.xlu0 %v541_v5 }
 0x1f1   :  { %565 = vadd.xlane.f32.xlu1 %v561_v15  ;;  %v729_v15 = vld [vmem:[%s1298_s5 + $0x48] sm:$0xff] }
 0x1f3   :  { %571 = vadd.xlane.f32.xlu0 %v564_v16 }
 0x1f5   :  { %700 = vadd.xlane.f32.xlu1 %v905_v7 }
 0x1f7   :  { %567 = vadd.xlane.f32.xlu0 %v562_v17 }
 0x1f9   :  { %696 = vadd.xlane.f32.xlu1 %v681_v9  ;;  %v731_v9 = vld [vmem:[%s1298_s5 + $0x58] sm:$0xff] }
 0x1fb   :  { %702 = vadd.xlane.f32.xlu0 %v906_v10 }
 0x1fd   :  { %708 = vadd.xlane.f32.xlu1 %v704_v18 }
 0x1ff   :  { %698 = vadd.xlane.f32.xlu0 %v684_v12 }
 0x201   :  { %712 = vadd.xlane.f32.xlu1 %v706_v19 }
 0x203   :  { %710 = vadd.xlane.f32.xlu0 %v705_v20 }
 0x207   :  { %714 = vadd.xlane.f32.xlu0 %v707_v21  ;;  %v732_v21 = vld [vmem:[%s1298_s5 + $0x60] sm:$0xff] }
 0x254   :  { %v271_v22 = vpop.xlane.xlu0 %270 }
 0x256   :  { %v283_v24 = vpop.xlane.xlu1 %282 }
 0x257   :  { %v289_v25 = vsel %vm286_vm2, %v271_v22, %v283_v24 }
 0x258   :  { %v738_v26 = vadd.f32 %v722_v23, %v289_v25  ;;  %v267_v27 = vpop.xlane.xlu0 %266 }
 0x25a   :  { %755 = vst.msk [vmem:[%s1298_s5 + $0x10] sm:$0xff] %vm42_vm1, %v738_v26  ;;  %v269_v28 = vpop.xlane.xlu1 %268  ;;  %v734_v26 = vld [vmem:[%s1298_s5 + $0x70] sm:$0xff] }
 0x25c   :  { %v273_v29 = vpop.xlane.xlu0 %272 }
 0x25e   :  { %v279_v31 = vpop.xlane.xlu1 %278 }
 0x25f   :  { %v287_v32 = vsel %vm286_vm2, %v267_v27, %v279_v31 }
 0x260   :  { %v736_v34 = vadd.f32 %v720_v30, %v287_v32  ;;  %v285_v42 = vpop.xlane.xlu0 %284 }
 0x261   :  { %v290_v43 = vsel %vm286_vm2, %v273_v29, %v285_v42  ;;  %v733_v29 = vld [vmem:[%s1298_s5 + $0x68] sm:$0xff] }
 0x262   :  { %753 = vst.msk [vmem:[%s1298_s5] sm:$0xff] %vm42_vm1, %v736_v34  ;;  %v739_v44 = vadd.f32 %v723_v33, %v290_v43  ;;  %v415_v46 = vpop.xlane.xlu1 %414  ;;  %v735_v34 = vld [vmem:[%s1298_s5 + $0x78] sm:$0xff] }
 0x264   :  { %756 = vst.msk [vmem:[%s1298_s5 + $0x18] sm:$0xff] %vm42_vm1, %v739_v44  ;;  %v281_v48 = vpop.xlane.xlu0 %280 }
 0x265   :  { %v288_v49 = vsel %vm286_vm2, %v269_v28, %v281_v48 }
 0x266   :  { %v737_v50 = vadd.f32 %v721_v47, %v288_v49  ;;  %v411_v52 = vpop.xlane.xlu1 %410 }
 0x268   :  { %754 = vst.msk [vmem:[%s1298_s5 + $0x8] sm:$0xff] %vm42_vm1, %v737_v50  ;;  %v417_v53 = vpop.xlane.xlu0 %416 }
 0x26a   :  { %v427_v36 = vpop.xlane.xlu1 %426 }
 0x26b   :  { %v432_v45 = vsel %vm286_vm2, %v415_v46, %v427_v36 }
 0x26c   :  { %v742_v54 = vadd.f32 %v726_v40, %v432_v45  ;;  %v413_v41 = vpop.xlane.xlu0 %412 }
 0x26e   :  { %759 = vst.msk [vmem:[%s1298_s5 + $0x30] sm:$0xff] %vm42_vm1, %v742_v54  ;;  %v423_v37 = vpop.xlane.xlu1 %422 }
 0x26f   :  { %v430_v56 = vsel %vm286_vm2, %v411_v52, %v423_v37 }
 0x270   :  { %v740_v39 = vadd.f32 %v724_v55, %v430_v56  ;;  %v429_v51 = vpop.xlane.xlu0 %428 }
 0x271   :  { %v433_v57 = vsel %vm286_vm2, %v417_v53, %v429_v51 }
 0x272   :  { %757 = vst.msk [vmem:[%s1298_s5 + $0x20] sm:$0xff] %vm42_vm1, %v740_v39  ;;  %v743_v58 = vadd.f32 %v727_v38, %v433_v57  ;;  %v558_v59 = vpop.xlane.xlu1 %557 }
 0x274   :  { %760 = vst.msk [vmem:[%s1298_s5 + $0x38] sm:$0xff] %vm42_vm1, %v743_v58  ;;  %v425_v61 = vpop.xlane.xlu0 %424 }
 0x275   :  { %v431_v62 = vsel %vm286_vm2, %v413_v41, %v425_v61 }
 0x276   :  { %v741_v35 = vadd.f32 %v725_v60, %v431_v62  ;;  %v554_v63 = vpop.xlane.xlu1 %553 }
 0x278   :  { %758 = vst.msk [vmem:[%s1298_s5 + $0x28] sm:$0xff] %vm42_vm1, %v741_v35  ;;  %v560_v0 = vpop.xlane.xlu0 %559 }
 0x27a   :  { %v570_v2 = vpop.xlane.xlu1 %569 }
 0x27b   :  { %v575_v3 = vsel %vm286_vm2, %v558_v59, %v570_v2 }
 0x27c   :  { %v746_v4 = vadd.f32 %v730_v1, %v575_v3  ;;  %v556_v5 = vpop.xlane.xlu0 %555 }
 0x27e   :  { %763 = vst.msk [vmem:[%s1298_s5 + $0x50] sm:$0xff] %vm42_vm1, %v746_v4  ;;  %v566_v7 = vpop.xlane.xlu1 %565 }
 0x27f   :  { %v573_v8 = vsel %vm286_vm2, %v554_v63, %v566_v7 }
 0x280   :  { %v744_v10 = vadd.f32 %v728_v6, %v573_v8  ;;  %v572_v11 = vpop.xlane.xlu0 %571 }
 0x281   :  { %v576_v12 = vsel %vm286_vm2, %v560_v0, %v572_v11 }
 0x282   :  { %761 = vst.msk [vmem:[%s1298_s5 + $0x40] sm:$0xff] %vm42_vm1, %v744_v10  ;;  %v747_v13 = vadd.f32 %v731_v9, %v576_v12  ;;  %v701_v14 = vpop.xlane.xlu1 %700 }
 0x284   :  { %764 = vst.msk [vmem:[%s1298_s5 + $0x58] sm:$0xff] %vm42_vm1, %v747_v13  ;;  %v568_v16 = vpop.xlane.xlu0 %567 }
 0x285   :  { %v574_v17 = vsel %vm286_vm2, %v556_v5, %v568_v16 }
 0x286   :  { %v745_v18 = vadd.f32 %v729_v15, %v574_v17  ;;  %v697_v19 = vpop.xlane.xlu1 %696 }
 0x288   :  { %762 = vst.msk [vmem:[%s1298_s5 + $0x48] sm:$0xff] %vm42_vm1, %v745_v18  ;;  %v703_v20 = vpop.xlane.xlu0 %702 }
 0x28a   :  { %v709_v22 = vpop.xlane.xlu1 %708 }
 0x28b   :  { %v716_v23 = vsel %vm286_vm2, %v697_v19, %v709_v22 }
 0x28c   :  { %v748_v24 = vadd.f32 %v732_v21, %v716_v23  ;;  %v699_v25 = vpop.xlane.xlu0 %698 }
 0x28e   :  { %765 = vst.msk [vmem:[%s1298_s5 + $0x60] sm:$0xff] %vm42_vm1, %v748_v24  ;;  %v713_v27 = vpop.xlane.xlu1 %712 }
 0x28f   :  { %v718_v28 = vsel %vm286_vm2, %v701_v14, %v713_v27 }
 0x290   :  { %v750_v30 = vadd.f32 %v734_v26, %v718_v28  ;;  %v711_v31 = vpop.xlane.xlu0 %710 }
 0x291   :  { %v717_v32 = vsel %vm286_vm2, %v699_v25, %v711_v31 }
 0x292   :  { %767 = vst.msk [vmem:[%s1298_s5 + $0x70] sm:$0xff] %vm42_vm1, %v750_v30  ;;  %v749_v33 = vadd.f32 %v733_v29, %v717_v32 }
 0x294   :  { %766 = vst.msk [vmem:[%s1298_s5 + $0x68] sm:$0xff] %vm42_vm1, %v749_v33  ;;  %v715_v42 = vpop.xlane.xlu0 %714 }
 0x295   :  { %v719_v43 = vsel %vm286_vm2, %v703_v20, %v715_v42 }
 0x296   :  { %v751_v44 = vadd.f32 %v735_v34, %v719_v43 }
 0x298   :  { %768 = vst.msk [vmem:[%s1298_s5 + $0x78] sm:$0xff] %vm42_vm1, %v751_v44 }

// kernel: se_basic_block.5
= control target key start
LH: loop header
LB: loop body
LE: loop exit
PB: predicated region body
PF: predicated region fallthrough
CT: control target
= control target key end

     0   :  { %vm71_vm0 = vcmask 261120   ;;  %v1031_v5 = vmov 0   ;;  %s1442_s0 = inlined_call_operand.vmem [shape: f32[4,32,128], index: 0, kind: input, shape index: {}]   ;;  %s1443_s1 = inlined_call_operand.vmem [shape: bf16[32,32], index: 1, kind: input, shape index: {}]   ;;  %s1444_s2 = inlined_call_operand.vmem [shape: bf16[32,32], index: 2, kind: input, shape index: {}]   ;;  %s1445_s3 = inlined_call_operand.vmem [shape: f32[32,1], index: 3, kind: input, shape index: {}]   ;;  %s1446_s4 = inlined_call_operand.vmem [shape: f32[32,1], index: 4, kind: input, shape index: {}]   ;;  %s1447_s5 = inlined_call_operand.vmem [shape: f32[32,1], index: 5, kind: input, shape index: {}]   ;;  %s1448_s6 = inlined_call_operand.vmem [shape: f32[32,1], index: 6, kind: input, shape index: {}]   ;;  %s1449_s7 = inlined_call_operand.vmem [shape: f32[4,32,1], index: 7, kind: input, shape index: {}]   ;;  %s1450_s8 = inlined_call_operand.hbm [shape: f32[4,32,128], index: 8, kind: output, shape index: {}]  }
   0x1   :  { %v1083_v0 = vld [vmem:[%s1442_s0] sm:$0xff]  ;;  %v1088_v1 = vld [vmem:[%s1442_s0 + $0x8] sm:$0xff]  ;;  %v1093_v2 = vld [vmem:[%s1442_s0 + $0x10] sm:$0xff]  ;;  %1002 = vset.pattern.permute.xlu1 %v1031_v5  ;;  %1001 = vset.pattern.permute.xlu0 %v1031_v5 }
   0x2   :  { %v59_v3 = vpack.c.bf16 %v1088_v1, %v1083_v0  ;;  %v1100_v4 = vld [vmem:[%s1442_s0 + $0x18] sm:$0xff]  ;;  %v1107_v7 = vld [vmem:[%s1443_s1] sm:$0xff]   ;;  %v1117_v9 = vld [vmem:[%s1442_s0 + $0x28] sm:$0xff] }
   0x3   :  { %v60_v6 = vpack.c.bf16 %v1100_v4, %v1093_v2  ;;  %v1112_v8 = vld [vmem:[%s1442_s0 + $0x20] sm:$0xff]  ;;  %937 = vmatprep.mubr.msk.bf16.mxu0 %vm71_vm0, %v1107_v7  ;;  %v1126_v11 = vld [vmem:[%s1442_s0 + $0x30] sm:$0xff]  ;;  %v1131_v12 = vld [vmem:[%s1442_s0 + $0x38] sm:$0xff] }
   0x4   :  { %933 = vmatprep.subr.bf16.mxu0 %v59_v3  ;;  %v339_v10 = vpack.c.bf16 %v1117_v9, %v1112_v8  ;;  %v1136_v13 = vld [vmem:[%s1443_s1 + $0x8] sm:$0xff]   ;;  %v43_v14 = vld [vmem:[%s1446_s4] sm:$0xff]  ;;  %v340_v16 = vpack.c.bf16 %v1131_v12, %v1126_v11  ;;  %v1171_v22 = vld [vmem:[%s1442_s0 + $0x50] sm:$0xff] }
   0x5   :  { %934 = vmatpush3.bf16.msra.mxu0 %v59_v3  ;;  %v39_v15 = vld [vmem:[%s1445_s3] sm:$0xff]  ;;  %153 = vperm.xlu1 %1002, %v43_v14   ;;  %v1154_v18 = vld [vmem:[%s1442_s0 + $0x48] sm:$0xff]  ;;  %v1176_v23 = vld [vmem:[%s1442_s0 + $0x58] sm:$0xff] }
   0x6   :  { %935 = vmatprep.subr.bf16.mxu0 %v60_v6  ;;  %129 = vperm.xlu0 %1001, %v39_v15   ;;  %v1149_v17 = vld [vmem:[%s1442_s0 + $0x40] sm:$0xff]  ;;  %v44_v19 = vld [vmem:[%s1446_s4 + $0x8] sm:$0xff]  ;;  %v42_v24 = vld [vmem:[%s1445_s3 + $0x18] sm:$0xff]  ;;  %v509_v26 = vpack.c.bf16 %v1176_v23, %v1171_v22 }
   0x7   :  { %v40_v20 = vld [vmem:[%s1445_s3 + $0x8] sm:$0xff]  ;;  %v508_v21 = vpack.c.bf16 %v1154_v18, %v1149_v17  ;;  %v41_v25 = vld [vmem:[%s1445_s3 + $0x10] sm:$0xff]  ;;  %v1189_v27 = vld [vmem:[%s1442_s0 + $0x60] sm:$0xff] }
   0x8   :  { %v1194_v28 = vld [vmem:[%s1442_s0 + $0x68] sm:$0xff]  ;;  %v46_v29 = vld [vmem:[%s1446_s4 + $0x18] sm:$0xff]  ;;  %v45_v30 = vld [vmem:[%s1446_s4 + $0x10] sm:$0xff] }
   0x9   :  { %936 = vmatpush3.bf16.msra.mxu0 %v60_v6  ;;  %158 = vperm.xlu1 %1002, %v44_v19  }
   0xa   :  { %949 = vmatprep.subr.bf16.mxu0 %v339_v10  ;;  %134 = vperm.xlu0 %1001, %v40_v20  }
   0xc   :  { %938 = vmatmul.mubr.msk.bf16.vlgmr.msra.gmra.mrb[0].mxu0 %vm71_vm0, %v1136_v13 }
   0xd   :  { %950 = vmatpush3.bf16.msra.mxu0 %v339_v10  ;;  %953 = vmatprep.mubr.msk.bf16.mxu0 %vm71_vm0, %v1107_v7 }
   0xe   :  { %951 = vmatprep.subr.bf16.mxu0 %v340_v16  ;;  %144 = vperm.xlu1 %1002, %v42_v24  }
   0xf   :  { %139 = vperm.xlu0 %1001, %v41_v25  }
  0x11   :  { %952 = vmatpush3.bf16.msra.mxu0 %v340_v16 }
  0x12   :  { %965 = vmatprep.subr.bf16.mxu0 %v508_v21 }
  0x14   :  { %954 = vmatmul.mubr.msk.bf16.vlgmr.msra.gmra.mrb[4].mxu0 %vm71_vm0, %v1136_v13 }
  0x15   :  { %13 = vsyncpa [#allocation3], 0  ;;  %966 = vmatpush3.bf16.msra.mxu0 %v508_v21  ;;  %969 = vmatprep.mubr.msk.bf16.mxu0 %vm71_vm0, %v1107_v7  ;;  %v677_v31 = vpack.c.bf16 %v1194_v28, %v1189_v27  ;;  %v1211_v32 = vld [vmem:[%s1442_s0 + $0x70] sm:$0xff]  ;;  %v1216_v33 = vld [vmem:[%s1442_s0 + $0x78] sm:$0xff] }
  0x16   :  { %967 = vmatprep.subr.bf16.mxu0 %v509_v26  ;;  %168 = vperm.xlu1 %1002, %v46_v29   ;;  %v48_v34 = vld [vmem:[%s1447_s5 + $0x8] sm:$0xff]  ;;  %v47_v35 = vld [vmem:[%s1447_s5] sm:$0xff]  ;;  %v678_v36 = vpack.c.bf16 %v1216_v33, %v1211_v32  ;;  %v50_v37 = vld [vmem:[%s1447_s5 + $0x18] sm:$0xff] }
  0x17   :  { %163 = vperm.xlu0 %1001, %v45_v30   ;;  %v49_v38 = vld [vmem:[%s1447_s5 + $0x10] sm:$0xff]  ;;  %v52_v39 = vld [vmem:[%s1448_s6 + $0x8] sm:$0xff]  ;;  %v51_v40 = vld [vmem:[%s1448_s6] sm:$0xff] }
  0x18   :  { %v54_v41 = vld [vmem:[%s1448_s6 + $0x18] sm:$0xff]  ;;  %v53_v42 = vld [vmem:[%s1448_s6 + $0x10] sm:$0xff]  ;;  %v295_v43 = vld [vmem:[%s1449_s7 + $0x8] sm:$0xff] }
  0x19   :  { %968 = vmatpush3.bf16.msra.mxu0 %v509_v26  ;;  %v294_v44 = vld [vmem:[%s1449_s7] sm:$0xff]  ;;  %v297_v45 = vld [vmem:[%s1449_s7 + $0x18] sm:$0xff]  ;;  %v296_v46 = vld [vmem:[%s1449_s7 + $0x10] sm:$0xff] }
  0x1a   :  { %981 = vmatprep.subr.bf16.mxu0 %v677_v31  ;;  %253 = vperm.xlu1 %1002, %v48_v34   ;;  %v874_v47 = vld [vmem:[%s1449_s7 + $0x28] sm:$0xff]  ;;  %v873_v48 = vld [vmem:[%s1449_s7 + $0x20] sm:$0xff]  ;;  %v876_v49 = vld [vmem:[%s1449_s7 + $0x38] sm:$0xff] }
  0x1b   :  { %248 = vperm.xlu0 %1001, %v47_v35   ;;  %v875_v50 = vld [vmem:[%s1449_s7 + $0x30] sm:$0xff]  ;;  %v886_v51 = vld [vmem:[%s1449_s7 + $0x48] sm:$0xff]  ;;  %v885_v52 = vld [vmem:[%s1449_s7 + $0x40] sm:$0xff] }
  0x1c   :  { %970 = vmatmul.mubr.msk.bf16.vlgmr.msra.gmra.mrb[8].mxu0 %vm71_vm0, %v1136_v13  ;;  %v888_v53 = vld [vmem:[%s1449_s7 + $0x58] sm:$0xff]  ;;  %v887_v54 = vld [vmem:[%s1449_s7 + $0x50] sm:$0xff]  ;;  %v898_v55 = vld [vmem:[%s1449_s7 + $0x68] sm:$0xff] }
  0x1d   :  { %982 = vmatpush3.bf16.msra.mxu0 %v677_v31  ;;  %985 = vmatprep.mubr.msk.bf16.mxu0 %vm71_vm0, %v1107_v7  ;;  %v897_v56 = vld [vmem:[%s1449_s7 + $0x60] sm:$0xff]  ;;  %v900_v57 = vld [vmem:[%s1449_s7 + $0x78] sm:$0xff]  ;;  %v899_v58 = vld [vmem:[%s1449_s7 + $0x70] sm:$0xff] }
  0x1e   :  { %983 = vmatprep.subr.bf16.mxu0 %v678_v36  ;;  %263 = vperm.xlu1 %1002, %v50_v37   ;;  %v1301_v59 = vld [vmem:[%s1444_s2] sm:$0xff]  }
  0x1f   :  { %258 = vperm.xlu0 %1001, %v49_v38   ;;  %945 = vmatprep.mubr.msk.bf16.mxu1 %vm71_vm0, %v1301_v59 }
  0x21   :  { %984 = vmatpush3.bf16.msra.mxu0 %v678_v36 }
  0x22   :  { %277 = vperm.xlu1 %1002, %v52_v39  }
  0x23   :  { %272 = vperm.xlu0 %1001, %v51_v40  }
  0x24   :  { %986 = vmatmul.mubr.msk.bf16.vlgmr.msra.gmra.mrb[12].mxu0 %vm71_vm0, %v1136_v13 }
  0x26   :  { %287 = vperm.xlu1 %1002, %v54_v41  }
  0x27   :  { %282 = vperm.xlu0 %1001, %v53_v42  }
  0x2a   :  { %305 = vperm.xlu1 %1002, %v295_v43  }
  0x2b   :  { %300 = vperm.xlu0 %1001, %v294_v44  }
  0x2e   :  { %315 = vperm.xlu1 %1002, %v297_v45  }
  0x2f   :  { %310 = vperm.xlu0 %1001, %v296_v46  }
  0x32   :  { %473 = vperm.xlu1 %1002, %v874_v47  }
  0x33   :  { %468 = vperm.xlu0 %1001, %v873_v48  }
  0x36   :  { %483 = vperm.xlu1 %1002, %v876_v49  }
  0x37   :  { %478 = vperm.xlu0 %1001, %v875_v50  }
  0x3a   :  { %642 = vperm.xlu1 %1002, %v886_v51  }
  0x3b   :  { %637 = vperm.xlu0 %1001, %v885_v52  }
  0x3e   :  { %652 = vperm.xlu1 %1002, %v888_v53  }
  0x3f   :  { %647 = vperm.xlu0 %1001, %v887_v54  }
  0x42   :  { %811 = vperm.xlu1 %1002, %v898_v55   ;;  %v1006_v55 = vld [vmem:[%s1444_s2 + $0x8] sm:$0xff]   ;;  %s1032_s2 = smov [#allocation2]  }
  0x43   :  { %806 = vperm.xlu0 %1001, %v897_v56   ;;  %s846_s29 = sshll.u32 %s1032_s2, 4  ;;  %s847_s29 = int_to_ptr.vmem [resolvable:$true] %s846_s29 }
  0x44   :  { %s1007_s6 = scalar_lea.vmem %s847_s29, 2048  ;;  %p1012_p1 = scmp.lt.s32.totalorder %s847_s29, %s847_s29 }
  0x45   :  { %p1008_p0 = scmp.ne.s32.totalorder %s847_s29, %s1007_s6  ;;  %p1013_p2 = scmp.lt.s32.totalorder %s1007_s6, %s1007_s6 }
  0x46   :  { %821 = vperm.xlu1 %1002, %v900_v57  }
  0x47   :  { %816 = vperm.xlu0 %1001, %v899_v58   ;;  %p1014_p3 = por %p1013_p2, %p1012_p1 }
  0x49   :  { %p1015_p4 = pnand %p1014_p3, %p1008_p0 }
  0x84   :  { %v1307_v61 = vpop.permute.xlu1 %153 }
  0x85   :  { %v1305_v60 = vpop.permute.xlu0 %129 }
  0x88   :  { %v1311_v63 = vpop.permute.xlu1 %158 }
  0x89   :  { %v1309_v62 = vpop.permute.xlu0 %134 }
  0x8d   :  { %v1315_v5 = vpop.permute.xlu1 %144 }
  0x8e   :  { %v1313_v3 = vpop.permute.xlu0 %139 }
  0x95   :  { %v1323_v21 = vpop.permute.xlu1 %168 }
  0x96   :  { %v1318_v13 = vpop.permute.xlu0 %163 }
  0xdf   :  { %v939_v6 = vpop.f32.mrb[0].mxu0 }
  0xe0   :  { %v149_v7 = vmul.f32 %v939_v6, %v1313_v3  ;;  %v112_v10 = vpop.f32.mrb[1].mxu0 }
  0xe1   :  { %v147_v14 = vmul.f32 %v1305_v60, %v112_v10  ;;  %v940_v15 = vpop.f32.mrb[2].mxu0 }
  0xe2   :  { %v173_v16 = vadd.f32 %v1318_v13, %v149_v7  ;;  %v150_v19 = vmul.f32 %v940_v15, %v1315_v5  ;;  %v115_v20 = vpop.f32.mrb[3].mxu0 }
  0xe3   :  { %v171_v24 = vadd.f32 %v1307_v61, %v147_v14  ;;  %v148_v25 = vmul.f32 %v1309_v62, %v115_v20 }
  0xe4   :  { %v174_v26 = vadd.f32 %v1323_v21, %v150_v19  ;;  %v177_v30 = vmax.f32 %v173_v16, 0.0 }
  0xe5   :  { %v172_v29 = vadd.f32 %v1311_v63, %v148_v25  ;;  %v175_v34 = vmax.f32 %v171_v24, 0.0 }
  0xe6   :  { %v178_v31 = vmax.f32 %v174_v26, 0.0 }
  0xe7   :  { %v176_v35 = vmax.f32 %v172_v29, 0.0  ;;  %v955_v36 = vpop.f32.mrb[4].mxu0 }
  0xe8   :  { %v392_v37 = vmul.f32 %v955_v36, %v1313_v3  ;;  %v375_v38 = vpop.f32.mrb[5].mxu0  ;;  %v180_v39 = vpack.c.bf16 %v178_v31, %v177_v30 }
  0xe9   :  { %v390_v40 = vmul.f32 %v375_v38, %v1305_v60  ;;  %v956_v41 = vpop.f32.mrb[6].mxu0  ;;  %v179_v42 = vpack.c.bf16 %v176_v35, %v175_v34 }
  0xea   :  { %v396_v43 = vadd.f32 %v392_v37, %v1318_v13  ;;  %v393_v44 = vmul.f32 %v956_v41, %v1315_v5  ;;  %v378_v45 = vpop.f32.mrb[7].mxu0 }
  0xeb   :  { %v394_v46 = vadd.f32 %v390_v40, %v1307_v61  ;;  %v391_v47 = vmul.f32 %v378_v45, %v1309_v62  ;;  %941 = vmatprep.subr.bf16.mxu1 %v179_v42 }
  0xec   :  { %v397_v48 = vadd.f32 %v393_v44, %v1323_v21  ;;  %942 = vmatpush3.bf16.msra.mxu1 %v179_v42  ;;  %v400_v50 = vmax.f32 %v396_v43, 0.0 }
  0xed   :  { %v395_v49 = vadd.f32 %v391_v47, %v1311_v63  ;;  %943 = vmatprep.subr.bf16.mxu1 %v180_v39  ;;  %v398_v52 = vmax.f32 %v394_v46, 0.0 }
  0xee   :  { %v401_v51 = vmax.f32 %v397_v48, 0.0 }
  0xef   :  { %v399_v53 = vmax.f32 %v395_v49, 0.0  ;;  %v971_v54 = vpop.f32.mrb[8].mxu0 }
  0xf0   :  { %v561_v56 = vmul.f32 %v971_v54, %v1313_v3  ;;  %944 = vmatpush3.bf16.msra.mxu1 %v180_v39  ;;  %v544_v57 = vpop.f32.mrb[9].mxu0  ;;  %v403_v58 = vpack.c.bf16 %v401_v51, %v400_v50 }
  0xf1   :  { %v559_v6 = vmul.f32 %v544_v57, %v1305_v60  ;;  %v972_v7 = vpop.f32.mrb[10].mxu0  ;;  %v402_v10 = vpack.c.bf16 %v399_v53, %v398_v52 }
  0xf2   :  { %v565_v14 = vadd.f32 %v561_v56, %v1318_v13  ;;  %v562_v15 = vmul.f32 %v972_v7, %v1315_v5  ;;  %v547_v16 = vpop.f32.mrb[11].mxu0 }
  0xf3   :  { %v563_v19 = vadd.f32 %v559_v6, %v1307_v61  ;;  %v560_v20 = vmul.f32 %v547_v16, %v1309_v62  ;;  %946 = vmatmul.mubr.msk.bf16.vlgmr.msra.gmra.mrb[0].mxu1 %vm71_vm0, %v1006_v55  ;;  %957 = vmatprep.subr.bf16.mxu1 %v402_v10 }
  0xf4   :  { %v566_v24 = vadd.f32 %v562_v15, %v1323_v21  ;;  %958 = vmatpush3.bf16.msra.mxu1 %v402_v10  ;;  %961 = vmatprep.mubr.msk.bf16.mxu1 %vm71_vm0, %v1301_v59  ;;  %v569_v26 = vmax.f32 %v565_v14, 0.0 }
  0xf5   :  { %v564_v25 = vadd.f32 %v560_v20, %v1311_v63  ;;  %959 = vmatprep.subr.bf16.mxu1 %v403_v58  ;;  %v567_v30 = vmax.f32 %v563_v19, 0.0 }
  0xf6   :  { %v570_v29 = vmax.f32 %v566_v24, 0.0 }
  0xf7   :  { %v568_v31 = vmax.f32 %v564_v25, 0.0  ;;  %v987_v34 = vpop.f32.mrb[12].mxu0 }
  0xf8   :  { %v730_v35 = vmul.f32 %v987_v34, %v1313_v3  ;;  %960 = vmatpush3.bf16.msra.mxu1 %v403_v58  ;;  %v713_v36 = vpop.f32.mrb[13].mxu0  ;;  %v572_v37 = vpack.c.bf16 %v570_v29, %v569_v26 }
  0xf9   :  { %v728_v38 = vmul.f32 %v713_v36, %v1305_v60  ;;  %v988_v39 = vpop.f32.mrb[14].mxu0  ;;  %v571_v40 = vpack.c.bf16 %v568_v31, %v567_v30 }
  0xfa   :  { %v734_v41 = vadd.f32 %v730_v35, %v1318_v13  ;;  %v731_v42 = vmul.f32 %v988_v39, %v1315_v5  ;;  %v716_v43 = vpop.f32.mrb[15].mxu0 }
  0xfb   :  { %v732_v44 = vadd.f32 %v728_v38, %v1307_v61  ;;  %v729_v45 = vmul.f32 %v716_v43, %v1309_v62  ;;  %962 = vmatmul.mubr.msk.bf16.vlgmr.msra.gmra.mrb[4].mxu1 %vm71_vm0, %v1006_v55  ;;  %973 = vmatprep.subr.bf16.mxu1 %v571_v40  ;;  %v1366_v62 = vpop.permute.xlu0 %248 }
  0xfc   :  { %v735_v3 = vadd.f32 %v731_v42, %v1323_v21  ;;  %974 = vmatpush3.bf16.msra.mxu1 %v571_v40  ;;  %977 = vmatprep.mubr.msk.bf16.mxu1 %vm71_vm0, %v1301_v59  ;;  %v738_v13 = vmax.f32 %v734_v41, 0.0 }
  0xfd   :  { %v733_v60 = vadd.f32 %v729_v45, %v1311_v63  ;;  %975 = vmatprep.subr.bf16.mxu1 %v572_v37  ;;  %v736_v5 = vmax.f32 %v732_v44, 0.0  ;;  %v1368_v63 = vpop.permute.xlu1 %253 }
  0xfe   :  { %v739_v46 = vmax.f32 %v735_v3, 0.0 }
  0xff   :  { %v737_v47 = vmax.f32 %v733_v60, 0.0  ;;  %v1370_v21 = vpop.permute.xlu0 %258 }
 0x100   :  { %976 = vmatpush3.bf16.msra.mxu1 %v572_v37  ;;  %v741_v61 = vpack.c.bf16 %v739_v46, %v738_v13 }
 0x101   :  { %v740_v48 = vpack.c.bf16 %v737_v47, %v736_v5  ;;  %v1372_v49 = vpop.permute.xlu1 %263 }
 0x103   :  { %978 = vmatmul.mubr.msk.bf16.vlgmr.msra.gmra.mrb[8].mxu1 %vm71_vm0, %v1006_v55  ;;  %989 = vmatprep.subr.bf16.mxu1 %v740_v48  ;;  %v1374_v50 = vpop.permute.xlu0 %272 }
 0x104   :  { %990 = vmatpush3.bf16.msra.mxu1 %v740_v48  ;;  %993 = vmatprep.mubr.msk.bf16.mxu1 %vm71_vm0, %v1301_v59 }
 0x105   :  { %991 = vmatprep.subr.bf16.mxu1 %v741_v61  ;;  %v1376_v51 = vpop.permute.xlu1 %277 }
 0x107   :  { %v1378_v52 = vpop.permute.xlu0 %282 }
 0x108   :  { %992 = vmatpush3.bf16.msra.mxu1 %v741_v61 }
 0x109   :  { %v1380_v53 = vpop.permute.xlu1 %287 }
 0x10b   :  { %994 = vmatmul.mubr.msk.bf16.vlgmr.msra.gmra.mrb[12].mxu1 %vm71_vm0, %v1006_v55  ;;  %v301_v59 = vpop.permute.xlu0 %300 }
 0x10d   :  { %v306_v54 = vpop.permute.xlu1 %305 }
 0x10f   :  { %v311_v56 = vpop.permute.xlu0 %310 }
 0x111   :  { %v316_v55 = vpop.permute.xlu1 %315 }
 0x113   :  { %v469_v57 = vpop.permute.xlu0 %468 }
 0x115   :  { %v474_v58 = vpop.permute.xlu1 %473 }
 0x117   :  { %v479_v24 = vpop.permute.xlu0 %478 }
 0x119   :  { %v484_v31 = vpop.permute.xlu1 %483 }
 0x11b   :  { %v638_v45 = vpop.permute.xlu0 %637 }
 0x11d   :  { %v643_v61 = vpop.permute.xlu1 %642 }
 0x1c6   :  { %v947_v6 = vpop.f32.mrb[0].mxu1 }
 0x1c7   :  { %v268_v7 = vmul.f32 %v947_v6, %v1370_v21  ;;  %v231_v10 = vpop.f32.mrb[1].mxu1 }
 0x1c8   :  { %v266_v14 = vmul.f32 %v1366_v62, %v231_v10  ;;  %v948_v15 = vpop.f32.mrb[2].mxu1  ;;  %v648_v10 = vpop.permute.xlu0 %647 }
 0x1c9   :  { %v292_v16 = vadd.f32 %v1378_v52, %v268_v7  ;;  %v269_v19 = vmul.f32 %v948_v15, %v1372_v49  ;;  %v234_v20 = vpop.f32.mrb[3].mxu1 }
 0x1ca   :  { %v290_v25 = vadd.f32 %v1374_v50, %v266_v14  ;;  %v267_v26 = vmul.f32 %v1368_v63, %v234_v20 }
 0x1cb   :  { %v320_v29 = vmul.f32 %v311_v56, %v292_v16  ;;  %v293_v30 = vadd.f32 %v1380_v53, %v269_v19 }
 0x1cc   :  { %v318_v34 = vmul.f32 %v301_v59, %v290_v25  ;;  %v291_v35 = vadd.f32 %v1376_v51, %v267_v26  ;;  %v653_v26 = vpop.permute.xlu1 %652 }
 0x1cd   :  { %v324_v36 = vadd.f32 %v320_v29, %v1093_v2  ;;  %v321_v37 = vmul.f32 %v316_v55, %v293_v30 }
 0x1ce   :  { %v322_v38 = vadd.f32 %v318_v34, %v1083_v0  ;;  %v319_v39 = vmul.f32 %v306_v54, %v291_v35  ;;  %v963_v40 = vpop.f32.mrb[4].mxu1 }
 0x1cf   :  { %v328_v41 = vmax.f32 %v324_v36, 0.0  ;;  %v325_v42 = vadd.f32 %v321_v37, %v1100_v4  ;;  %v455_v43 = vmul.f32 %v963_v40, %v1370_v21  ;;  %v438_v44 = vpop.f32.mrb[5].mxu1 }
 0x1d0   :  { %v326_v3 = vmax.f32 %v322_v38, 0.0  ;;  %v323_v60 = vadd.f32 %v319_v39, %v1088_v1  ;;  %v453_v13 = vmul.f32 %v438_v44, %v1366_v62  ;;  %v964_v46 = vpop.f32.mrb[6].mxu1  ;;  %v807_v38 = vpop.permute.xlu0 %806 }
 0x1d1   :  { %332 = vst [vmem:[#allocation2 + $0x10] sm:$0xff] %v328_v41  ;;  %v329_v2 = vmax.f32 %v325_v42, 0.0  ;;  %v459_v5 = vadd.f32 %v455_v43, %v1378_v52  ;;  %v456_v0 = vmul.f32 %v964_v46, %v1372_v49  ;;  %v441_v47 = vpop.f32.mrb[7].mxu1  ;;  %v812_v43 = vpop.permute.xlu1 %811 }
 0x1d2   :  { %330 = vst [vmem:[#allocation2] sm:$0xff] %v326_v3  ;;  %v327_v4 = vmax.f32 %v323_v60, 0.0  ;;  %v457_v48 = vadd.f32 %v453_v13, %v1374_v50  ;;  %v454_v59 = vmul.f32 %v441_v47, %v1368_v63 }
 0x1d3   :  { %333 = vst [vmem:[#allocation2 + $0x18] sm:$0xff] %v329_v2  ;;  %v488_v54 = vmul.f32 %v479_v24, %v459_v5  ;;  %v460_v1 = vadd.f32 %v456_v0, %v1380_v53 }
 0x1d4   :  { %331 = vst [vmem:[#allocation2 + $0x8] sm:$0xff] %v327_v4  ;;  %v486_v56 = vmul.f32 %v469_v57, %v457_v48  ;;  %v458_v55 = vadd.f32 %v454_v59, %v1376_v51  ;;  %v817_v59 = vpop.permute.xlu0 %816 }
 0x1d5   :  { %v492_v6 = vadd.f32 %v1126_v11, %v488_v54  ;;  %v489_v7 = vmul.f32 %v484_v31, %v460_v1 }
 0x1d6   :  { %v490_v14 = vadd.f32 %v1112_v8, %v486_v56  ;;  %v487_v15 = vmul.f32 %v474_v58, %v458_v55  ;;  %v979_v16 = vpop.f32.mrb[8].mxu1 }
 0x1d7   :  { %v496_v19 = vmax.f32 %v492_v6, 0.0  ;;  %v493_v20 = vadd.f32 %v1131_v12, %v489_v7  ;;  %v624_v25 = vmul.f32 %v979_v16, %v1370_v21  ;;  %v607_v24 = vpop.f32.mrb[9].mxu1 }
 0x1d8   :  { %v494_v29 = vmax.f32 %v490_v14, 0.0  ;;  %v491_v57 = vadd.f32 %v1117_v9, %v487_v15  ;;  %v622_v30 = vmul.f32 %v607_v24, %v1366_v62  ;;  %v980_v34 = vpop.f32.mrb[10].mxu1 }
 0x1d9   :  { %501 = vst [vmem:[#allocation2 + $0x30] sm:$0xff] %v496_v19  ;;  %v497_v11 = vmax.f32 %v493_v20, 0.0  ;;  %v628_v31 = vadd.f32 %v624_v25, %v1378_v52  ;;  %v625_v8 = vmul.f32 %v980_v34, %v1372_v49  ;;  %v610_v58 = vpop.f32.mrb[11].mxu1 }
 0x1da   :  { %499 = vst [vmem:[#allocation2 + $0x20] sm:$0xff] %v494_v29  ;;  %v495_v35 = vmax.f32 %v491_v57, 0.0  ;;  %v626_v12 = vadd.f32 %v622_v30, %v1374_v50  ;;  %v623_v36 = vmul.f32 %v610_v58, %v1368_v63 }
 0x1db   :  { %502 = vst [vmem:[#allocation2 + $0x38] sm:$0xff] %v497_v11  ;;  %v657_v37 = vmul.f32 %v648_v10, %v628_v31  ;;  %v629_v9 = vadd.f32 %v625_v8, %v1380_v53 }
 0x1dc   :  { %500 = vst [vmem:[#allocation2 + $0x28] sm:$0xff] %v495_v35  ;;  %v655_v39 = vmul.f32 %v638_v45, %v626_v12  ;;  %v627_v40 = vadd.f32 %v623_v36, %v1376_v51 }
 0x1dd   :  { %v661_v41 = vadd.f32 %v1171_v22, %v657_v37  ;;  %v658_v42 = vmul.f32 %v653_v26, %v629_v9 }
 0x1de   :  { %v659_v44 = vadd.f32 %v1149_v17, %v655_v39  ;;  %v656_v3 = vmul.f32 %v643_v61, %v627_v40  ;;  %v995_v60 = vpop.f32.mrb[12].mxu1 }
 0x1df   :  { %v665_v13 = vmax.f32 %v661_v41, 0.0  ;;  %v662_v46 = vadd.f32 %v1176_v23, %v658_v42  ;;  %v793_v2 = vmul.f32 %v995_v60, %v1370_v21  ;;  %v776_v5 = vpop.f32.mrb[13].mxu1 }
 0x1e0   :  { %v663_v0 = vmax.f32 %v659_v44, 0.0  ;;  %v660_v47 = vadd.f32 %v1154_v18, %v656_v3  ;;  %v791_v45 = vmul.f32 %v776_v5, %v1366_v62  ;;  %v996_v4 = vpop.f32.mrb[14].mxu1  ;;  %v822_v62 = vpop.permute.xlu1 %821 }
 0x1e1   :  { %670 = vst [vmem:[#allocation2 + $0x50] sm:$0xff] %v665_v13  ;;  %v666_v22 = vmax.f32 %v662_v46, 0.0  ;;  %v797_v48 = vadd.f32 %v793_v2, %v1378_v52  ;;  %v794_v17 = vmul.f32 %v996_v4, %v1372_v49  ;;  %v779_v61 = vpop.f32.mrb[15].mxu1 }
 0x1e2   :  { %668 = vst [vmem:[#allocation2 + $0x40] sm:$0xff] %v663_v0  ;;  %v664_v54 = vmax.f32 %v660_v47, 0.0  ;;  %v795_v23 = vadd.f32 %v791_v45, %v1374_v50  ;;  %v792_v21 = vmul.f32 %v779_v61, %v1368_v63 }
 0x1e3   :  { %671 = vst [vmem:[#allocation2 + $0x58] sm:$0xff] %v666_v22  ;;  %v826_v1 = vmul.f32 %v817_v59, %v797_v48  ;;  %v798_v18 = vadd.f32 %v794_v17, %v1380_v53 }
 0x1e4   :  { %669 = vst [vmem:[#allocation2 + $0x48] sm:$0xff] %v664_v54  ;;  %v824_v56 = vmul.f32 %v807_v38, %v795_v23  ;;  %v796_v55 = vadd.f32 %v792_v21, %v1376_v51 }
 0x1e5   :  { %v830_v52 = vadd.f32 %v1211_v32, %v826_v1  ;;  %v827_v49 = vmul.f32 %v822_v62, %v798_v18 }
 0x1e6   :  { %v828_v6 = vadd.f32 %v1189_v27, %v824_v56  ;;  %v825_v7 = vmul.f32 %v812_v43, %v796_v55 }
 0x1e7   :  { %v834_v50 = vmax.f32 %v830_v52, 0.0  ;;  %v831_v63 = vadd.f32 %v1216_v33, %v827_v49 }
 0x1e8   :  { %v832_v10 = vmax.f32 %v828_v6, 0.0  ;;  %v829_v14 = vadd.f32 %v1194_v28, %v825_v7 }
 0x1e9   :  { %839 = vst [vmem:[#allocation2 + $0x70] sm:$0xff] %v834_v50  ;;  %v835_v53 = vmax.f32 %v831_v63, 0.0 }
 0x1ea   :  { %837 = vst [vmem:[#allocation2 + $0x60] sm:$0xff] %v832_v10  ;;  %v833_v15 = vmax.f32 %v829_v14, 0.0 }
 0x1eb   :  { %840 = vst [vmem:[#allocation2 + $0x78] sm:$0xff] %v835_v53 }
 0x1ec   :  { %838 = vst [vmem:[#allocation2 + $0x68] sm:$0xff] %v833_v15 }
 0x1ed   :  { %1018 = shalt.err (!%p1015_p4)
}
 0x1ee   :  { %s1019_s9 = scalar_lea.hbm %s1450_s8, 2048 }
 0x1ef   :  { %p1020_p5 = scmp.ne.s32.totalorder %s1450_s8, %s1019_s9  ;;  %p1023_p6 = scmp.lt.u32.totalorder %s1019_s9, %s1450_s8 }
 0x1f1   :  { %p1025_p7 = pnand %p1023_p6, %p1020_p5 }
 0x1f3   :  { %1028 = shalt.err (!%p1025_p7)
}
 0x1f4   :  { %s1033_s13 = smov 128   ;;  %s1034_s14 = smov 8  }
 0x1f5   :  { %852 = dma.vmem_to_hbm [thread:$0]  %s847_s29, 2048, %s1450_s8, [#allocation3], %s1033_s13, %s1033_s13, %s1034_s14  }
 0x1f6   :  { %1029 = dma.done.wait [#allocation3], 2048  }
 0x1f7   :  { %1030 = vsyncadd [#allocation3], 4294965248 }
 0x1f8   :  { %856 = vsyncpa [#allocation3], 1 }

</bundles_post_ra>
